<compile_context>
chip_gen: v5e
topology: v5e:2x2
jax: 0.10.0
libtpu: 0.0.40
codegen_flags: <defaults>
</compile_context>

<pallas_src>
import numpy as np
import jax
import jax.numpy as jnp
from jax.experimental import pallas as pl
from jax.experimental.pallas import tpu as pltpu

POOL_W = 11  # AdaptiveAvgPool2d((1, 11)) target width


def _relu(x):
    return jnp.maximum(x, 0.0)


def _adaptive_avg_matrix(in_size: int, out_size: int) -> np.ndarray:
    """Row-stochastic matrix implementing 1-D adaptive average pooling."""
    m = np.zeros((out_size, in_size), np.float32)
    for o in range(out_size):
        lo = (o * in_size) // out_size
        hi = -(-((o + 1) * in_size) // out_size)  # ceil division
        m[o, lo:hi] = 1.0 / (hi - lo)
    return m


def _build_kernel(H: int, need_pw: bool):
    """Kernel factory; H and the (rare) adaptive-W path are baked in statically."""
    inv_h = 1.0 / float(H)
    f32 = jnp.float32

    def kernel(*refs):
        if need_pw:
            (x_ref, w1_ref, w2_ref, w3_ref, pw_ref,
             w4_ref, b4_ref, w5_ref, b5_ref, w6_ref, b6_ref,
             s4_ref, t4_ref, p2_ref, o_ref) = refs
        else:
            (x_ref, w1_ref, w2_ref, w3_ref,
             w4_ref, b4_ref, w5_ref, b5_ref, w6_ref, b6_ref,
             s4_ref, t4_ref, p2_ref, o_ref) = refs
            pw_ref = None

        w1 = w1_ref[...]
        w2 = w2_ref[...]
        w3 = w3_ref[...]

        # conv1 (three 1x1 convs + ReLU) fused with pool1's average over H:
        # each h-plane is [B_blk*W, C] rows ordered (b, w); accumulate planes.
        acc = None
        for h in range(H):  # static, small
            t = _relu(jnp.dot(x_ref[h], w1, preferred_element_type=f32))
            t = _relu(jnp.dot(t, w2, preferred_element_type=f32))
            t = _relu(jnp.dot(t, w3, preferred_element_type=f32))
            acc = t if acc is None else acc + t
        p = acc * inv_h                                    # [B_blk*W, 128]

        if need_pw:
            # adaptive W -> 11 pooling (identity, hence skipped, when W == 11)
            p = jnp.dot(pw_ref[...], p, preferred_element_type=f32)

        # conv2 with BatchNorm folded into the weights (done in the wrapper):
        # each step is matmul + bias + ReLU.
        z = _relu(jnp.dot(p, w4_ref[...], preferred_element_type=f32) + b4_ref[...])
        z = _relu(jnp.dot(z, w5_ref[...], preferred_element_type=f32) + b5_ref[...])
        z = _relu(jnp.dot(z, w6_ref[...], preferred_element_type=f32) + b6_ref[...])

        # pool2 (mean over the 11 pooled columns per batch element), then the
        # final BN as a tiny [B_blk, F] epilogue (commutes with the average).
        out = jnp.dot(p2_ref[...], z, preferred_element_type=f32)
        out = out * s4_ref[...] + t4_ref[...]
        o_ref[...] = out.astype(o_ref.dtype)

    return kernel


def cnn_model_forward(inputs, w1, w2, w3, w4, w5, w6,
                      s1, t1, s2, t2, s3, t3, s4, t4):
    """Forward pass of CNNModel (eval-mode BatchNorm).

    inputs: dict with 'cnn_feature' of shape [B, 53, H, W] (NCHW).
    w*:     [Cin, Cout] 1x1 conv weights (== torch weight[:, :, 0, 0].T).
    s*/t*:  per-channel folded BatchNorm scale / shift (eval mode).
    Returns [B, final_filters].
    """
    x = inputs["cnn_feature"].astype(jnp.float32)
    B, C, H, W = x.shape
    F = w6.shape[1]
    f32 = jnp.float32

    # ---- fold BN(scale, shift) into the following conv weights (review #1) ----
    def fold(w, s, t):
        wf = (w.astype(f32) * s.astype(f32)[:, None])
        bf = (t.astype(f32) @ w.astype(f32)).reshape(1, -1)
        return wf, bf

    w4f, b4 = fold(w4, s1, t1)
    w5f, b5 = fold(w5, s2, t2)
    w6f, b6 = fold(w6, s3, t3)
    s4r = s4.reshape(1, -1).astype(f32)
    t4r = t4.reshape(1, -1).astype(f32)

    # ---- batch blocking: linear-in-B footprint, megacore-parallel grid -------
    MAX_B_BLK = 32                      # conv2 sees 11*32=352 rows (>=256 MXU)
    if B <= MAX_B_BLK:
        b_blk, b_pad = B, B
    else:
        b_blk = MAX_B_BLK
        b_pad = -(-B // b_blk) * b_blk
    grid = (b_pad // b_blk,)

    # ---- layout plumbing (wrapper-side): NCHW -> [H, B_pad*W, C_pad] ---------
    # rows within a plane are ordered (b, w); channels are lane-dense; channel
    # dim is zero-padded 53 -> 64.
    C_PAD = -(-C // 64) * 64
    xp = jnp.pad(x, ((0, b_pad - B), (0, C_PAD - C), (0, 0), (0, 0)))
    xr = jnp.transpose(xp, (2, 0, 3, 1)).reshape(H, b_pad * W, C_PAD)

    w1p = jnp.pad(w1.astype(f32), ((0, C_PAD - C), (0, 0)))
    w2f = w2.astype(f32)
    w3f = w3.astype(f32)

    # ---- per-block pooling constants (size independent of total B) -----------
    need_pw = (W != POOL_W)
    consts = [w1p, w2f, w3f]
    if need_pw:
        pw = _adaptive_avg_matrix(W, POOL_W)               # [11, W]
        pw_blk = jnp.asarray(np.kron(np.eye(b_blk, dtype=np.float32), pw))
        consts.append(pw_blk)
    p2_blk = jnp.asarray(np.kron(np.eye(b_blk, dtype=np.float32),
                                 np.full((1, POOL_W), 1.0 / POOL_W, np.float32)))
    consts += [w4f, b4, w5f, b5, w6f, b6, s4r, t4r, p2_blk]

    # ---- specs ----------------------------------------------------------------
    x_spec = pl.BlockSpec((H, b_blk * W, C_PAD), lambda i: (0, i, 0))

    def const_spec(arr):
        return pl.BlockSpec(arr.shape, lambda i: (0, 0))   # resident, all 2-D

    in_specs = [x_spec] + [const_spec(a) for a in consts]
    out_spec = pl.BlockSpec((b_blk, F), lambda i: (i, 0))

    out = pl.pallas_call(
        _build_kernel(H, need_pw),
        out_shape=jax.ShapeDtypeStruct((b_pad, F), f32),
        grid=grid,
        in_specs=in_specs,
        out_specs=out_spec,
        compiler_params=pltpu.CompilerParams(
            dimension_semantics=("parallel",)),
    )(xr, *consts)

    return out[:B]


def _reference(x, weights, bn_params, eps=1e-5):
    """Pure-JAX NCHW reference of CNNModel.forward (eval-mode BatchNorm)."""
    w1, w2, w3, w4, w5, w6 = weights
    conv = lambda t, w: jnp.einsum("bchw,cd->bdhw", t, w)
    relu = jax.nn.relu

    def bn(t, params):
        g, b, m, v = params
        inv = jax.lax.rsqrt(v + eps)
        return ((t - m[None, :, None, None]) * (g * inv)[None, :, None, None]
                + b[None, :, None, None])

    y = relu(conv(x, w1))
    y = relu(conv(y, w2))
    y = relu(conv(y, w3))
    # AdaptiveAvgPool2d((1, 11))
    _, _, H, W = y.shape
    ph = jnp.asarray(_adaptive_avg_matrix(H, 1))
    pw = jnp.asarray(_adaptive_avg_matrix(W, POOL_W))
    y = jnp.einsum("oh,bchw->bcow", ph, y)
    y = jnp.einsum("pw,bcow->bcop", pw, y)
    z = bn(y, bn_params[0])
    z = relu(conv(z, w4)); z = bn(z, bn_params[1])
    z = relu(conv(z, w5)); z = bn(z, bn_params[2])
    z = relu(conv(z, w6)); z = bn(z, bn_params[3])
    return jnp.mean(z, axis=(2, 3))        # AdaptiveAvgPool2d((1,1)) + Flatten


if __name__ == "__main__":
    B, C_IN, H, W = 2, 53, 4, 11
    FINAL_FILTERS = 64
    EPS = 1e-5

    key = jax.random.PRNGKey(0)
    ks = jax.random.split(key, 11)

    x = jax.random.normal(ks[0], (B, C_IN, H, W), jnp.float32)

    def mk_w(k, cin, cout):
        bound = 1.0 / (cin ** 0.5)
        return jax.random.uniform(k, (cin, cout), jnp.float32, -bound, bound)

    w1 = mk_w(ks[1], C_IN, 128)
    w2 = mk_w(ks[2], 128, 160)
    w3 = mk_w(ks[3], 160, 128)
    w4 = mk_w(ks[4], 128, 160)
    w5 = mk_w(ks[5], 160, 96)
    w6 = mk_w(ks[6], 96, FINAL_FILTERS)

    def mk_bn(k, c):
        kg, kb, km, kv = jax.random.split(k, 4)
        gamma = jax.random.uniform(kg, (c,), jnp.float32, 0.8, 1.2)
        beta = jax.random.uniform(kb, (c,), jnp.float32, -0.1, 0.1)
        mean = jax.random.uniform(km, (c,), jnp.float32, -0.1, 0.1)
        var = jax.random.uniform(kv, (c,), jnp.float32, 0.5, 1.5)
        return gamma, beta, mean, var

    bn1 = mk_bn(ks[7], 128)
    bn2 = mk_bn(ks[8], 160)
    bn3 = mk_bn(ks[9], 96)
    bn4 = mk_bn(ks[10], FINAL_FILTERS)

    def fold_bn(bn):
        g, b, m, v = bn
        s = g * jax.lax.rsqrt(v + EPS)
        return s, b - m * s

    s1, t1 = fold_bn(bn1)
    s2, t2 = fold_bn(bn2)
    s3, t3 = fold_bn(bn3)
    s4, t4 = fold_bn(bn4)

    out = cnn_model_forward({"cnn_feature": x},
                            w1, w2, w3, w4, w5, w6,
                            s1, t1, s2, t2, s3, t3, s4, t4)
    out = jax.block_until_ready(out)

    ref = _reference(x, (w1, w2, w3, w4, w5, w6), (bn1, bn2, bn3, bn4), EPS)
    assert out.shape == (B, FINAL_FILTERS)
    assert jnp.allclose(out, ref, atol=1e-4, rtol=1e-4), "mismatch vs reference"

    print("KERNEL_OK")
</pallas_src>

<mosaic_0001>
module attributes {stable_mosaic.version = 11 : i64} {
  func.func @kernel(%arg0: i32, %arg1: memref<4x22x64xf32, #tpu.memory_space<vmem>>, %arg2: memref<64x128xf32, #tpu.memory_space<vmem>>, %arg3: memref<128x160xf32, #tpu.memory_space<vmem>>, %arg4: memref<160x128xf32, #tpu.memory_space<vmem>>, %arg5: memref<128x160xf32, #tpu.memory_space<vmem>>, %arg6: memref<1x160xf32, #tpu.memory_space<vmem>>, %arg7: memref<160x96xf32, #tpu.memory_space<vmem>>, %arg8: memref<1x96xf32, #tpu.memory_space<vmem>>, %arg9: memref<96x64xf32, #tpu.memory_space<vmem>>, %arg10: memref<1x64xf32, #tpu.memory_space<vmem>>, %arg11: memref<1x64xf32, #tpu.memory_space<vmem>>, %arg12: memref<1x64xf32, #tpu.memory_space<vmem>>, %arg13: memref<2x22xf32, #tpu.memory_space<vmem>>, %arg14: memref<2x64xf32, #tpu.memory_space<vmem>>) attributes {dimension_semantics = [#tpu.dimension_semantics<parallel>], iteration_bounds = array<i64: 1>, scalar_prefetch = 0 : i64, scratch_operands = 0 : i64, tpu.core_type = #tpu.core_type<tc>, window_params = [{transform_indices = @transform_0, window_bounds = array<i64: 4, 22, 64>}, {pipeline_mode = #tpu.pipeline_mode<synchronous>, transform_indices = @transform_1, window_bounds = array<i64: 64, 128>}, {pipeline_mode = #tpu.pipeline_mode<synchronous>, transform_indices = @transform_2, window_bounds = array<i64: 128, 160>}, {pipeline_mode = #tpu.pipeline_mode<synchronous>, transform_indices = @transform_3, window_bounds = array<i64: 160, 128>}, {pipeline_mode = #tpu.pipeline_mode<synchronous>, transform_indices = @transform_4, window_bounds = array<i64: 128, 160>}, {pipeline_mode = #tpu.pipeline_mode<synchronous>, transform_indices = @transform_5, window_bounds = array<i64: 1, 160>}, {pipeline_mode = #tpu.pipeline_mode<synchronous>, transform_indices = @transform_6, window_bounds = array<i64: 160, 96>}, {pipeline_mode = #tpu.pipeline_mode<synchronous>, transform_indices = @transform_7, window_bounds = array<i64: 1, 96>}, {pipeline_mode = #tpu.pipeline_mode<synchronous>, transform_indices = @transform_8, window_bounds = array<i64: 96, 64>}, {pipeline_mode = #tpu.pipeline_mode<synchronous>, transform_indices = @transform_9, window_bounds = array<i64: 1, 64>}, {pipeline_mode = #tpu.pipeline_mode<synchronous>, transform_indices = @transform_10, window_bounds = array<i64: 1, 64>}, {pipeline_mode = #tpu.pipeline_mode<synchronous>, transform_indices = @transform_11, window_bounds = array<i64: 1, 64>}, {pipeline_mode = #tpu.pipeline_mode<synchronous>, transform_indices = @transform_12, window_bounds = array<i64: 2, 22>}, {transform_indices = @transform_13, window_bounds = array<i64: 2, 64>}]} {
    %c0 = arith.constant 0 : index
    %c0_0 = arith.constant 0 : index
    %0 = vector.load %arg2[%c0, %c0_0] : memref<64x128xf32, #tpu.memory_space<vmem>>, vector<64x128xf32>
    %c0_1 = arith.constant 0 : index
    %c0_2 = arith.constant 0 : index
    %1 = vector.load %arg3[%c0_1, %c0_2] : memref<128x160xf32, #tpu.memory_space<vmem>>, vector<128x160xf32>
    %c0_3 = arith.constant 0 : index
    %c0_4 = arith.constant 0 : index
    %2 = vector.load %arg4[%c0_3, %c0_4] : memref<160x128xf32, #tpu.memory_space<vmem>>, vector<160x128xf32>
    %c0_5 = arith.constant 0 : index
    %c0_6 = arith.constant 0 : index
    %c0_7 = arith.constant 0 : index
    %3 = vector.load %arg1[%c0_5, %c0_6, %c0_7] : memref<4x22x64xf32, #tpu.memory_space<vmem>>, vector<1x22x64xf32>
    %4 = vector.shape_cast %3 : vector<1x22x64xf32> to vector<22x64xf32>
    %cst = arith.constant dense<0.000000e+00> : vector<22x128xf32>
    %5 = tpu.matmul %4, %0, %cst {dimension_numbers = #tpu.dot_dimension_numbers<[1], [0], [0], [1], [0, 0, 1, 1], [], []>} : vector<22x64xf32>, vector<64x128xf32>, vector<22x128xf32> -> vector<22x128xf32>
    %cst_8 = arith.constant 0.000000e+00 : f32
    %6 = vector.broadcast %cst_8 : f32 to vector<22x128xf32>
    %7 = arith.maximumf %5, %6 : vector<22x128xf32>
    %cst_9 = arith.constant dense<0.000000e+00> : vector<22x160xf32>
    %8 = tpu.matmul %7, %1, %cst_9 {dimension_numbers = #tpu.dot_dimension_numbers<[1], [0], [0], [1], [0, 0, 1, 1], [], []>} : vector<22x128xf32>, vector<128x160xf32>, vector<22x160xf32> -> vector<22x160xf32>
    %cst_10 = arith.constant 0.000000e+00 : f32
    %9 = vector.broadcast %cst_10 : f32 to vector<22x160xf32>
    %10 = arith.maximumf %8, %9 : vector<22x160xf32>
    %cst_11 = arith.constant dense<0.000000e+00> : vector<22x128xf32>
    %11 = tpu.matmul %10, %2, %cst_11 {dimension_numbers = #tpu.dot_dimension_numbers<[1], [0], [0], [1], [0, 0, 1, 1], [], []>} : vector<22x160xf32>, vector<160x128xf32>, vector<22x128xf32> -> vector<22x128xf32>
    %cst_12 = arith.constant 0.000000e+00 : f32
    %12 = vector.broadcast %cst_12 : f32 to vector<22x128xf32>
    %13 = arith.maximumf %11, %12 : vector<22x128xf32>
    %c1 = arith.constant 1 : index
    %c0_13 = arith.constant 0 : index
    %c0_14 = arith.constant 0 : index
    %14 = vector.load %arg1[%c1, %c0_13, %c0_14] : memref<4x22x64xf32, #tpu.memory_space<vmem>>, vector<1x22x64xf32>
    %15 = vector.shape_cast %14 : vector<1x22x64xf32> to vector<22x64xf32>
    %cst_15 = arith.constant dense<0.000000e+00> : vector<22x128xf32>
    %16 = tpu.matmul %15, %0, %cst_15 {dimension_numbers = #tpu.dot_dimension_numbers<[1], [0], [0], [1], [0, 0, 1, 1], [], []>} : vector<22x64xf32>, vector<64x128xf32>, vector<22x128xf32> -> vector<22x128xf32>
    %cst_16 = arith.constant 0.000000e+00 : f32
    %17 = vector.broadcast %cst_16 : f32 to vector<22x128xf32>
    %18 = arith.maximumf %16, %17 : vector<22x128xf32>
    %cst_17 = arith.constant dense<0.000000e+00> : vector<22x160xf32>
    %19 = tpu.matmul %18, %1, %cst_17 {dimension_numbers = #tpu.dot_dimension_numbers<[1], [0], [0], [1], [0, 0, 1, 1], [], []>} : vector<22x128xf32>, vector<128x160xf32>, vector<22x160xf32> -> vector<22x160xf32>
    %cst_18 = arith.constant 0.000000e+00 : f32
    %20 = vector.broadcast %cst_18 : f32 to vector<22x160xf32>
    %21 = arith.maximumf %19, %20 : vector<22x160xf32>
    %cst_19 = arith.constant dense<0.000000e+00> : vector<22x128xf32>
    %22 = tpu.matmul %21, %2, %cst_19 {dimension_numbers = #tpu.dot_dimension_numbers<[1], [0], [0], [1], [0, 0, 1, 1], [], []>} : vector<22x160xf32>, vector<160x128xf32>, vector<22x128xf32> -> vector<22x128xf32>
    %cst_20 = arith.constant 0.000000e+00 : f32
    %23 = vector.broadcast %cst_20 : f32 to vector<22x128xf32>
    %24 = arith.maximumf %22, %23 : vector<22x128xf32>
    %25 = arith.addf %13, %24 : vector<22x128xf32>
    %c2 = arith.constant 2 : index
    %c0_21 = arith.constant 0 : index
    %c0_22 = arith.constant 0 : index
    %26 = vector.load %arg1[%c2, %c0_21, %c0_22] : memref<4x22x64xf32, #tpu.memory_space<vmem>>, vector<1x22x64xf32>
    %27 = vector.shape_cast %26 : vector<1x22x64xf32> to vector<22x64xf32>
    %cst_23 = arith.constant dense<0.000000e+00> : vector<22x128xf32>
    %28 = tpu.matmul %27, %0, %cst_23 {dimension_numbers = #tpu.dot_dimension_numbers<[1], [0], [0], [1], [0, 0, 1, 1], [], []>} : vector<22x64xf32>, vector<64x128xf32>, vector<22x128xf32> -> vector<22x128xf32>
    %cst_24 = arith.constant 0.000000e+00 : f32
    %29 = vector.broadcast %cst_24 : f32 to vector<22x128xf32>
    %30 = arith.maximumf %28, %29 : vector<22x128xf32>
    %cst_25 = arith.constant dense<0.000000e+00> : vector<22x160xf32>
    %31 = tpu.matmul %30, %1, %cst_25 {dimension_numbers = #tpu.dot_dimension_numbers<[1], [0], [0], [1], [0, 0, 1, 1], [], []>} : vector<22x128xf32>, vector<128x160xf32>, vector<22x160xf32> -> vector<22x160xf32>
    %cst_26 = arith.constant 0.000000e+00 : f32
    %32 = vector.broadcast %cst_26 : f32 to vector<22x160xf32>
    %33 = arith.maximumf %31, %32 : vector<22x160xf32>
    %cst_27 = arith.constant dense<0.000000e+00> : vector<22x128xf32>
    %34 = tpu.matmul %33, %2, %cst_27 {dimension_numbers = #tpu.dot_dimension_numbers<[1], [0], [0], [1], [0, 0, 1, 1], [], []>} : vector<22x160xf32>, vector<160x128xf32>, vector<22x128xf32> -> vector<22x128xf32>
    %cst_28 = arith.constant 0.000000e+00 : f32
    %35 = vector.broadcast %cst_28 : f32 to vector<22x128xf32>
    %36 = arith.maximumf %34, %35 : vector<22x128xf32>
    %37 = arith.addf %25, %36 : vector<22x128xf32>
    %c3 = arith.constant 3 : index
    %c0_29 = arith.constant 0 : index
    %c0_30 = arith.constant 0 : index
    %38 = vector.load %arg1[%c3, %c0_29, %c0_30] : memref<4x22x64xf32, #tpu.memory_space<vmem>>, vector<1x22x64xf32>
    %39 = vector.shape_cast %38 : vector<1x22x64xf32> to vector<22x64xf32>
    %cst_31 = arith.constant dense<0.000000e+00> : vector<22x128xf32>
    %40 = tpu.matmul %39, %0, %cst_31 {dimension_numbers = #tpu.dot_dimension_numbers<[1], [0], [0], [1], [0, 0, 1, 1], [], []>} : vector<22x64xf32>, vector<64x128xf32>, vector<22x128xf32> -> vector<22x128xf32>
    %cst_32 = arith.constant 0.000000e+00 : f32
    %41 = vector.broadcast %cst_32 : f32 to vector<22x128xf32>
    %42 = arith.maximumf %40, %41 : vector<22x128xf32>
    %cst_33 = arith.constant dense<0.000000e+00> : vector<22x160xf32>
    %43 = tpu.matmul %42, %1, %cst_33 {dimension_numbers = #tpu.dot_dimension_numbers<[1], [0], [0], [1], [0, 0, 1, 1], [], []>} : vector<22x128xf32>, vector<128x160xf32>, vector<22x160xf32> -> vector<22x160xf32>
    %cst_34 = arith.constant 0.000000e+00 : f32
    %44 = vector.broadcast %cst_34 : f32 to vector<22x160xf32>
    %45 = arith.maximumf %43, %44 : vector<22x160xf32>
    %cst_35 = arith.constant dense<0.000000e+00> : vector<22x128xf32>
    %46 = tpu.matmul %45, %2, %cst_35 {dimension_numbers = #tpu.dot_dimension_numbers<[1], [0], [0], [1], [0, 0, 1, 1], [], []>} : vector<22x160xf32>, vector<160x128xf32>, vector<22x128xf32> -> vector<22x128xf32>
    %cst_36 = arith.constant 0.000000e+00 : f32
    %47 = vector.broadcast %cst_36 : f32 to vector<22x128xf32>
    %48 = arith.maximumf %46, %47 : vector<22x128xf32>
    %49 = arith.addf %37, %48 : vector<22x128xf32>
    %cst_37 = arith.constant 2.500000e-01 : f32
    %50 = vector.broadcast %cst_37 : f32 to vector<22x128xf32>
    %51 = arith.mulf %49, %50 : vector<22x128xf32>
    %c0_38 = arith.constant 0 : index
    %c0_39 = arith.constant 0 : index
    %52 = vector.load %arg5[%c0_38, %c0_39] : memref<128x160xf32, #tpu.memory_space<vmem>>, vector<128x160xf32>
    %cst_40 = arith.constant dense<0.000000e+00> : vector<22x160xf32>
    %53 = tpu.matmul %51, %52, %cst_40 {dimension_numbers = #tpu.dot_dimension_numbers<[1], [0], [0], [1], [0, 0, 1, 1], [], []>} : vector<22x128xf32>, vector<128x160xf32>, vector<22x160xf32> -> vector<22x160xf32>
    %c0_41 = arith.constant 0 : index
    %c0_42 = arith.constant 0 : index
    %54 = vector.load %arg6[%c0_41, %c0_42] : memref<1x160xf32, #tpu.memory_space<vmem>>, vector<1x160xf32>
    %55 = vector.broadcast %54 : vector<1x160xf32> to vector<22x160xf32>
    %56 = arith.addf %53, %55 : vector<22x160xf32>
    %cst_43 = arith.constant 0.000000e+00 : f32
    %57 = vector.broadcast %cst_43 : f32 to vector<22x160xf32>
    %58 = arith.maximumf %56, %57 : vector<22x160xf32>
    %c0_44 = arith.constant 0 : index
    %c0_45 = arith.constant 0 : index
    %59 = vector.load %arg7[%c0_44, %c0_45] : memref<160x96xf32, #tpu.memory_space<vmem>>, vector<160x96xf32>
    %cst_46 = arith.constant dense<0.000000e+00> : vector<22x96xf32>
    %60 = tpu.matmul %58, %59, %cst_46 {dimension_numbers = #tpu.dot_dimension_numbers<[1], [0], [0], [1], [0, 0, 1, 1], [], []>} : vector<22x160xf32>, vector<160x96xf32>, vector<22x96xf32> -> vector<22x96xf32>
    %c0_47 = arith.constant 0 : index
    %c0_48 = arith.constant 0 : index
    %61 = vector.load %arg8[%c0_47, %c0_48] : memref<1x96xf32, #tpu.memory_space<vmem>>, vector<1x96xf32>
    %62 = vector.broadcast %61 : vector<1x96xf32> to vector<22x96xf32>
    %63 = arith.addf %60, %62 : vector<22x96xf32>
    %cst_49 = arith.constant 0.000000e+00 : f32
    %64 = vector.broadcast %cst_49 : f32 to vector<22x96xf32>
    %65 = arith.maximumf %63, %64 : vector<22x96xf32>
    %c0_50 = arith.constant 0 : index
    %c0_51 = arith.constant 0 : index
    %66 = vector.load %arg9[%c0_50, %c0_51] : memref<96x64xf32, #tpu.memory_space<vmem>>, vector<96x64xf32>
    %cst_52 = arith.constant dense<0.000000e+00> : vector<22x64xf32>
    %67 = tpu.matmul %65, %66, %cst_52 {dimension_numbers = #tpu.dot_dimension_numbers<[1], [0], [0], [1], [0, 0, 1, 1], [], []>} : vector<22x96xf32>, vector<96x64xf32>, vector<22x64xf32> -> vector<22x64xf32>
    %c0_53 = arith.constant 0 : index
    %c0_54 = arith.constant 0 : index
    %68 = vector.load %arg10[%c0_53, %c0_54] : memref<1x64xf32, #tpu.memory_space<vmem>>, vector<1x64xf32>
    %69 = vector.broadcast %68 : vector<1x64xf32> to vector<22x64xf32>
    %70 = arith.addf %67, %69 : vector<22x64xf32>
    %cst_55 = arith.constant 0.000000e+00 : f32
    %71 = vector.broadcast %cst_55 : f32 to vector<22x64xf32>
    %72 = arith.maximumf %70, %71 : vector<22x64xf32>
    %c0_56 = arith.constant 0 : index
    %c0_57 = arith.constant 0 : index
    %73 = vector.load %arg13[%c0_56, %c0_57] : memref<2x22xf32, #tpu.memory_space<vmem>>, vector<2x22xf32>
    %cst_58 = arith.constant dense<0.000000e+00> : vector<2x64xf32>
    %74 = tpu.matmul %73, %72, %cst_58 {dimension_numbers = #tpu.dot_dimension_numbers<[1], [0], [0], [1], [0, 0, 1, 1], [], []>} : vector<2x22xf32>, vector<22x64xf32>, vector<2x64xf32> -> vector<2x64xf32>
    %c0_59 = arith.constant 0 : index
    %c0_60 = arith.constant 0 : index
    %75 = vector.load %arg11[%c0_59, %c0_60] : memref<1x64xf32, #tpu.memory_space<vmem>>, vector<1x64xf32>
    %76 = vector.broadcast %75 : vector<1x64xf32> to vector<2x64xf32>
    %77 = arith.mulf %74, %76 : vector<2x64xf32>
    %c0_61 = arith.constant 0 : index
    %c0_62 = arith.constant 0 : index
    %78 = vector.load %arg12[%c0_61, %c0_62] : memref<1x64xf32, #tpu.memory_space<vmem>>, vector<1x64xf32>
    %79 = vector.broadcast %78 : vector<1x64xf32> to vector<2x64xf32>
    %80 = arith.addf %77, %79 : vector<2x64xf32>
    %c0_63 = arith.constant 0 : index
    %c0_64 = arith.constant 0 : index
    %81 = vector.load %arg14[%c0_63, %c0_64] : memref<2x64xf32, #tpu.memory_space<vmem>>, vector<2x64xf32>
    tpu.vector_store %arg14[%c0_63, %c0_64], %80 {strides = array<i32>} : memref<2x64xf32, #tpu.memory_space<vmem>>, vector<2x64xf32>,
    return
  }
  func.func @transform_0(%arg0: i32) -> (i32, i32, i32) {
    %c0_i32 = arith.constant 0 : i32
    %c0_i32_0 = arith.constant 0 : i32
    %c0_i32_1 = arith.constant 0 : i32
    return %c0_i32, %arg0, %c0_i32_0 : i32, i32, i32
  }
  func.func @transform_1(%arg0: i32) -> (i32, i32) {
    %c0_i32 = arith.constant 0 : i32
    %c0_i32_0 = arith.constant 0 : i32
    %c0_i32_1 = arith.constant 0 : i32
    return %c0_i32, %c0_i32_0 : i32, i32
  }
  func.func @transform_2(%arg0: i32) -> (i32, i32) {
    %c0_i32 = arith.constant 0 : i32
    %c0_i32_0 = arith.constant 0 : i32
    %c0_i32_1 = arith.constant 0 : i32
    return %c0_i32, %c0_i32_0 : i32, i32
  }
  func.func @transform_3(%arg0: i32) -> (i32, i32) {
    %c0_i32 = arith.constant 0 : i32
    %c0_i32_0 = arith.constant 0 : i32
    %c0_i32_1 = arith.constant 0 : i32
    return %c0_i32, %c0_i32_0 : i32, i32
  }
  func.func @transform_4(%arg0: i32) -> (i32, i32) {
    %c0_i32 = arith.constant 0 : i32
    %c0_i32_0 = arith.constant 0 : i32
    %c0_i32_1 = arith.constant 0 : i32
    return %c0_i32, %c0_i32_0 : i32, i32
  }
  func.func @transform_5(%arg0: i32) -> (i32, i32) {
    %c0_i32 = arith.constant 0 : i32
    %c0_i32_0 = arith.constant 0 : i32
    %c0_i32_1 = arith.constant 0 : i32
    return %c0_i32, %c0_i32_0 : i32, i32
  }
  func.func @transform_6(%arg0: i32) -> (i32, i32) {
    %c0_i32 = arith.constant 0 : i32
    %c0_i32_0 = arith.constant 0 : i32
    %c0_i32_1 = arith.constant 0 : i32
    return %c0_i32, %c0_i32_0 : i32, i32
  }
  func.func @transform_7(%arg0: i32) -> (i32, i32) {
    %c0_i32 = arith.constant 0 : i32
    %c0_i32_0 = arith.constant 0 : i32
    %c0_i32_1 = arith.constant 0 : i32
    return %c0_i32, %c0_i32_0 : i32, i32
  }
  func.func @transform_8(%arg0: i32) -> (i32, i32) {
    %c0_i32 = arith.constant 0 : i32
    %c0_i32_0 = arith.constant 0 : i32
    %c0_i32_1 = arith.constant 0 : i32
    return %c0_i32, %c0_i32_0 : i32, i32
  }
  func.func @transform_9(%arg0: i32) -> (i32, i32) {
    %c0_i32 = arith.constant 0 : i32
    %c0_i32_0 = arith.constant 0 : i32
    %c0_i32_1 = arith.constant 0 : i32
    return %c0_i32, %c0_i32_0 : i32, i32
  }
  func.func @transform_10(%arg0: i32) -> (i32, i32) {
    %c0_i32 = arith.constant 0 : i32
    %c0_i32_0 = arith.constant 0 : i32
    %c0_i32_1 = arith.constant 0 : i32
    return %c0_i32, %c0_i32_0 : i32, i32
  }
  func.func @transform_11(%arg0: i32) -> (i32, i32) {
    %c0_i32 = arith.constant 0 : i32
    %c0_i32_0 = arith.constant 0 : i32
    %c0_i32_1 = arith.constant 0 : i32
    return %c0_i32, %c0_i32_0 : i32, i32
  }
  func.func @transform_12(%arg0: i32) -> (i32, i32) {
    %c0_i32 = arith.constant 0 : i32
    %c0_i32_0 = arith.constant 0 : i32
    %c0_i32_1 = arith.constant 0 : i32
    return %c0_i32, %c0_i32_0 : i32, i32
  }
  func.func @transform_13(%arg0: i32) -> (i32, i32) {
    %c0_i32 = arith.constant 0 : i32
    %c0_i32_0 = arith.constant 0 : i32
    return %arg0, %c0_i32 : i32, i32
  }
}

</mosaic_0001>

<bundles_post_ra>
// kernel: tpu_custom_call.1
= control target key start
LH: loop header
LB: loop body
LE: loop exit
PB: predicated region body
PF: predicated region fallthrough
CT: control target
= control target key end

     0   :  { %vm108_vm0 = vcmask 523264   ;;  %s2062_s0 = inlined_call_operand.vmem [shape: f32[4,22,64], index: 0, kind: input, shape index: {}]   ;;  %s2063_s1 = inlined_call_operand.vmem [shape: f32[64,128], index: 1, kind: input, shape index: {}]   ;;  %s2064_s2 = inlined_call_operand.vmem [shape: f32[128,160], index: 2, kind: input, shape index: {}]   ;;  %s2065_s3 = inlined_call_operand.vmem [shape: f32[160,128], index: 3, kind: input, shape index: {}]   ;;  %s2066_s4 = inlined_call_operand.vmem [shape: f32[128,160], index: 4, kind: input, shape index: {}]   ;;  %s2067_s5 = inlined_call_operand.vmem [shape: f32[1,160], index: 5, kind: input, shape index: {}]   ;;  %s2068_s6 = inlined_call_operand.vmem [shape: f32[160,96], index: 6, kind: input, shape index: {}]   ;;  %s2069_s7 = inlined_call_operand.vmem [shape: f32[1,96], index: 7, kind: input, shape index: {}]   ;;  %s2070_s8 = inlined_call_operand.vmem [shape: f32[96,64], index: 8, kind: input, shape index: {}]   ;;  %s2071_s9 = inlined_call_operand.vmem [shape: f32[1,64], index: 9, kind: input, shape index: {}]   ;;  %s2072_s10 = inlined_call_operand.vmem [shape: f32[1,64], index: 10, kind: input, shape index: {}]   ;;  %s2073_s11 = inlined_call_operand.vmem [shape: f32[1,64], index: 11, kind: input, shape index: {}]   ;;  %s2074_s12 = inlined_call_operand.vmem [shape: f32[2,22], index: 12, kind: input, shape index: {}]   ;;  %s2075_s13 = inlined_call_operand.hbm [shape: f32[2,64], index: 13, kind: output, shape index: {}]  }
   0x1   :  { %v1228_v0 = vld [vmem:[%s2063_s1 + $0x38] sm:$0xff]  ;;  %v1233_v1 = vld [vmem:[%s2063_s1 + $0x30] sm:$0xff]  ;;  %v1239_v2 = vld [vmem:[%s2063_s1 + $0x28] sm:$0xff] }
   0x2   :  { %126 = vmatpush.msra.mxu0 %v1228_v0  ;;  %v1245_v3 = vld [vmem:[%s2063_s1 + $0x20] sm:$0xff]  ;;  %v1250_v4 = vld [vmem:[%s2064_s2 + $0xf0] sm:$0xff]  ;;  %v1256_v5 = vld [vmem:[%s2064_s2 + $0xf8] sm:$0xff] }
   0x3   :  { %147 = vmatpush.msra.mxu1 %v1250_v4  ;;  %v1261_v6 = vld [vmem:[%s2064_s2 + $0xe0] sm:$0xff]  ;;  %v1266_v7 = vld [vmem:[%s2064_s2 + $0xe8] sm:$0xff]  ;;  %173 = vmatpush.msra.mxu2 %v1256_v5  ;;  %v1273_v8 = vld [vmem:[%s2064_s2 + $0xd0] sm:$0xff] }
   0x4   :  { %127 = vmatpush.msra.mxu0 %v1233_v1  ;;  %2078 = vst [vmem:[#allocation5_spill] sm:$0xff] %v1261_v6  ;;  %v1278_v9 = vld [vmem:[%s2063_s1 + $0x18] sm:$0xff]  ;;  %v1291_v11 = vld [vmem:[%s2064_s2 + $0xc0] sm:$0xff]  ;;  %v1296_v12 = vld [vmem:[%s2063_s1 + $0x10] sm:$0xff] }
   0x5   :  { %2079 = vst [vmem:[#allocation6_spill] sm:$0xff] %v1273_v8  ;;  %148 = vmatpush.msra.mxu1 %v1261_v6  ;;  %v1284_v10 = vld [vmem:[%s2064_s2 + $0xd8] sm:$0xff]  ;;  %174 = vmatpush.msra.mxu2 %v1266_v7  ;;  %v1302_v13 = vld [vmem:[%s2064_s2 + $0xc8] sm:$0xff]  ;;  %v1309_v14 = vld [vmem:[%s2064_s2 + $0xb0] sm:$0xff] }
   0x6   :  { %128 = vmatpush.msra.mxu0 %v1239_v2  ;;  %v1314_v15 = vld [vmem:[%s2063_s1 + $0x8] sm:$0xff]  ;;  %v1320_v16 = vld [vmem:[%s2064_s2 + $0xb8] sm:$0xff]  ;;  %v1326_v17 = vld [vmem:[%s2063_s1] sm:$0xff] }
   0x7   :  { %149 = vmatpush.msra.mxu1 %v1273_v8  ;;  %175 = vmatpush.msra.mxu2 %v1284_v10  ;;  %v1332_v18 = vld [vmem:[%s2064_s2 + $0xa0] sm:$0xff]  ;;  %v1341_v20 = vld [vmem:[%s2064_s2 + $0xa8] sm:$0xff]  ;;  %v1346_v21 = vld [vmem:[%s2064_s2 + $0x90] sm:$0xff] }
   0x8   :  { %129 = vmatpush.msra.mxu0 %v1245_v3  ;;  %v105_v19 = vld [vmem:[%s2062_s0] sm:$0xff]  ;;  %v1354_v22 = vld [vmem:[%s2064_s2 + $0x98] sm:$0xff] }
   0x9   :  { %150 = vmatpush.msra.mxu1 %v1291_v11  ;;  %176 = vmatpush.msra.mxu2 %v1302_v13 }
   0xa   :  { %130 = vmatpush.msra.mxu0 %v1278_v9 }
   0xb   :  { %151 = vmatpush.msra.mxu1 %v1309_v14  ;;  %177 = vmatpush.msra.mxu2 %v1320_v16 }
   0xc   :  { %131 = vmatpush.msra.mxu0 %v1296_v12 }
   0xd   :  { %152 = vmatpush.msra.mxu1 %v1332_v18 }
   0xe   :  { %132 = vmatpush.msra.mxu0 %v1314_v15 }
   0xf   :  { %18 = vsyncpa [#allocation3], 0  ;;  %178 = vmatpush.msra.mxu2 %v1341_v20  ;;  %v1361_v23 = vld [vmem:[%s2064_s2 + $0x80] sm:$0xff]  ;;  %153 = vmatpush.msra.mxu1 %v1346_v21  ;;  %v1368_v24 = vld [vmem:[%s2064_s2 + $0x88] sm:$0xff]  ;;  %vm205_vm1 = vcmask 261120   ;;  %vm974_vm2 = vcmask 785408  }
  0x10   :  { %133 = vmatpush.msra.mxu0 %v1326_v17  ;;  %v1374_v25 = vld [vmem:[%s2064_s2 + $0x70] sm:$0xff]  ;;  %v1380_v26 = vld [vmem:[%s2064_s2 + $0x78] sm:$0xff]  ;;  %v1386_v27 = vld [vmem:[%s2064_s2 + $0x60] sm:$0xff]  ;;  %vm1018_vm3 = vcmask 1045504   ;;  %vm1014_vm4 = vcmask 179200   ;;  %s1154_s26 = smov [#allocation2]  }
  0x11   :  { %1070 = vmatmul.msk.f32.vlgmr.msra.gmra.mxu0 %vm108_vm0, %v105_v19  ;;  %179 = vmatpush.msra.mxu2 %v1354_v22  ;;  %v1392_v28 = vld [vmem:[%s2064_s2 + $0x68] sm:$0xff]  ;;  %v1401_v30 = vld [vmem:[%s2064_s2 + $0x50] sm:$0xff]  ;;  %v1407_v31 = vld [vmem:[%s2064_s2 + $0x58] sm:$0xff]  ;;  %s1059_s27 = sshll.u32 %s1154_s26, 4  ;;  %vm1052_vm5 = vcmask 517120   ;;  %s1060_s27 = int_to_ptr.vmem [resolvable:$true] %s1059_s27 }
  0x12   :  { %154 = vmatpush.msra.mxu1 %v1361_v23  ;;  %v106_v29 = vld [vmem:[%s2062_s0 + $0x8] sm:$0xff]  ;;  %v1413_v32 = vld [vmem:[%s2064_s2 + $0x40] sm:$0xff]  ;;  %v1426_v34 = vld [vmem:[%s2064_s2 + $0x30] sm:$0xff] }
  0x13   :  { %180 = vmatpush.msra.mxu2 %v1368_v24  ;;  %v1420_v33 = vld [vmem:[%s2064_s2 + $0x48] sm:$0xff]  ;;  %v1432_v35 = vld [vmem:[%s2064_s2 + $0x38] sm:$0xff]  ;;  %v1438_v36 = vld [vmem:[%s2064_s2 + $0x20] sm:$0xff] }
  0x14   :  { %155 = vmatpush.msra.mxu1 %v1374_v25  ;;  %v1444_v37 = vld [vmem:[%s2064_s2 + $0x28] sm:$0xff]  ;;  %v107_v38 = vld [vmem:[%s2062_s0 + $0x10] sm:$0x3f]  ;;  %v1461_v40 = vld [vmem:[%s2064_s2 + $0x18] sm:$0xff] }
  0x15   :  { %181 = vmatpush.msra.mxu2 %v1380_v26  ;;  %v1456_v39 = vld [vmem:[%s2064_s2 + $0x10] sm:$0xff]  ;;  %v1468_v41 = vld [vmem:[%s2064_s2] sm:$0xff]  ;;  %v1473_v42 = vld [vmem:[%s2064_s2 + $0x8] sm:$0xff] }
  0x16   :  { %156 = vmatpush.msra.mxu1 %v1386_v27  ;;  %v1508_v47 = vld [vmem:[%s2065_s3 + $0x78] sm:$0xff]  ;;  %v1513_v48 = vld [vmem:[%s2065_s3 + $0x70] sm:$0xff]  ;;  %v1520_v49 = vld [vmem:[%s2065_s3 + $0x68] sm:$0xff] }
  0x17   :  { %182 = vmatpush.msra.mxu2 %v1392_v28  ;;  %215 = vmatpush.msra.mxu3 %v1508_v47  ;;  %v1527_v50 = vld [vmem:[%s2065_s3 + $0x60] sm:$0xff]  ;;  %v1534_v53 = vld [vmem:[%s2065_s3 + $0x58] sm:$0xff]  ;;  %v1541_v54 = vld [vmem:[%s2065_s3 + $0x50] sm:$0xff] }
  0x18   :  { %157 = vmatpush.msra.mxu1 %v1401_v30  ;;  %v1547_v55 = vld [vmem:[%s2065_s3 + $0x48] sm:$0xff]  ;;  %v1553_v56 = vld [vmem:[%s2065_s3 + $0x40] sm:$0xff]  ;;  %v1076_v57 = vld [vmem:[%s2062_s0 + $0x18] sm:$0xff] }
  0x19   :  { %1071 = vmatmul.msk.f32.gmra.mxu0 %vm108_vm0, %v106_v29  ;;  %183 = vmatpush.msra.mxu2 %v1407_v31  ;;  %v1562_v58 = vld [vmem:[%s2065_s3 + $0x38] sm:$0xff]  ;;  %v1569_v59 = vld [vmem:[%s2065_s3 + $0x30] sm:$0xff]  ;;  %v1575_v60 = vld [vmem:[%s2065_s3 + $0x28] sm:$0xff] }
  0x1a   :  { %158 = vmatpush.msra.mxu1 %v1413_v32  ;;  %216 = vmatpush.msra.mxu3 %v1513_v48  ;;  %v1581_v61 = vld [vmem:[%s2065_s3 + $0x20] sm:$0xff]  ;;  %v1590_v63 = vld [vmem:[%s2065_s3 + $0x18] sm:$0xff]  ;;  %v1597_v19 = vld [vmem:[%s2065_s3 + $0x10] sm:$0xff] }
  0x1b   :  { %184 = vmatpush.msra.mxu2 %v1420_v33  ;;  %v1077_v62 = vld [vmem:[%s2062_s0 + $0x20] sm:$0xff]  ;;  %v1603_v29 = vld [vmem:[%s2065_s3 + $0x8] sm:$0xff] }
  0x1c   :  { %159 = vmatpush.msra.mxu1 %v1426_v34  ;;  %217 = vmatpush.msra.mxu3 %v1520_v49 }
  0x1d   :  { %185 = vmatpush.msra.mxu2 %v1432_v35 }
  0x1e   :  { %160 = vmatpush.msra.mxu1 %v1438_v36  ;;  %218 = vmatpush.msra.mxu3 %v1527_v50 }
  0x1f   :  { %186 = vmatpush.msra.mxu2 %v1444_v37 }
  0x20   :  { %161 = vmatpush.msra.mxu1 %v1456_v39  ;;  %219 = vmatpush.msra.mxu3 %v1534_v53 }
  0x21   :  { %1072 = vmatmul.msk.f32.gmra.mxu0 %vm108_vm0, %v107_v38  ;;  %187 = vmatpush.msra.mxu2 %v1461_v40  ;;  %v1609_v38 = vld [vmem:[%s2065_s3] sm:$0xff] }
  0x22   :  { %162 = vmatpush.msra.mxu1 %v1468_v41  ;;  %220 = vmatpush.msra.mxu3 %v1541_v54 }
  0x23   :  { %188 = vmatpush.msra.mxu2 %v1473_v42 }
  0x24   :  { %291 = vmatpush.msrb.mxu1 %v1228_v0  ;;  %221 = vmatpush.msra.mxu3 %v1547_v55 }
  0x25   :  { %312 = vmatpush.msrb.mxu2 %v1250_v4 }
  0x26   :  { %292 = vmatpush.msrb.mxu1 %v1233_v1  ;;  %222 = vmatpush.msra.mxu3 %v1553_v56 }
  0x27   :  { %313 = vmatpush.msrb.mxu2 %v1261_v6 }
  0x28   :  { %293 = vmatpush.msrb.mxu1 %v1239_v2  ;;  %223 = vmatpush.msra.mxu3 %v1562_v58 }
  0x29   :  { %314 = vmatpush.msrb.mxu2 %v1273_v8 }
  0x2a   :  { %294 = vmatpush.msrb.mxu1 %v1245_v3  ;;  %224 = vmatpush.msra.mxu3 %v1569_v59 }
  0x2b   :  { %315 = vmatpush.msrb.mxu2 %v1291_v11 }
  0x2c   :  { %295 = vmatpush.msrb.mxu1 %v1278_v9  ;;  %225 = vmatpush.msra.mxu3 %v1575_v60 }
  0x2d   :  { %316 = vmatpush.msrb.mxu2 %v1309_v14 }
  0x2e   :  { %296 = vmatpush.msrb.mxu1 %v1296_v12  ;;  %226 = vmatpush.msra.mxu3 %v1581_v61 }
  0x2f   :  { %317 = vmatpush.msrb.mxu2 %v1332_v18 }
  0x30   :  { %297 = vmatpush.msrb.mxu1 %v1314_v15  ;;  %227 = vmatpush.msra.mxu3 %v1590_v63 }
  0x31   :  { %318 = vmatpush.msrb.mxu2 %v1346_v21 }
  0x32   :  { %298 = vmatpush.msrb.mxu1 %v1326_v17  ;;  %228 = vmatpush.msra.mxu3 %v1597_v19 }
  0x33   :  { %319 = vmatpush.msrb.mxu2 %v1361_v23 }
  0x34   :  { %229 = vmatpush.msra.mxu3 %v1603_v29 }
  0x35   :  { %320 = vmatpush.msrb.mxu2 %v1374_v25 }
  0x36   :  { %230 = vmatpush.msra.mxu3 %v1609_v38 }
  0x37   :  { %321 = vmatpush.msrb.mxu2 %v1386_v27 }
  0x38   :  { %338 = vmatpush.msrb.mxu3 %v1256_v5 }
  0x39   :  { %322 = vmatpush.msrb.mxu2 %v1401_v30 }
  0x3a   :  { %339 = vmatpush.msrb.mxu3 %v1266_v7 }
  0x3b   :  { %323 = vmatpush.msrb.mxu2 %v1413_v32 }
  0x3c   :  { %340 = vmatpush.msrb.mxu3 %v1284_v10 }
  0x3d   :  { %324 = vmatpush.msrb.mxu2 %v1426_v34 }
  0x3e   :  { %341 = vmatpush.msrb.mxu3 %v1302_v13 }
  0x3f   :  { %325 = vmatpush.msrb.mxu2 %v1438_v36 }
  0x40   :  { %342 = vmatpush.msrb.mxu3 %v1320_v16 }
  0x41   :  { %326 = vmatpush.msrb.mxu2 %v1456_v39 }
  0x42   :  { %343 = vmatpush.msrb.mxu3 %v1341_v20 }
  0x43   :  { %327 = vmatpush.msrb.mxu2 %v1468_v41 }
  0x44   :  { %344 = vmatpush.msrb.mxu3 %v1354_v22 }
  0x46   :  { %345 = vmatpush.msrb.mxu3 %v1368_v24 }
  0x48   :  { %346 = vmatpush.msrb.mxu3 %v1380_v26 }
  0x4a   :  { %347 = vmatpush.msrb.mxu3 %v1392_v28 }
  0x4c   :  { %348 = vmatpush.msrb.mxu3 %v1407_v31 }
  0x4e   :  { %349 = vmatpush.msrb.mxu3 %v1420_v33 }
  0x50   :  { %350 = vmatpush.msrb.mxu3 %v1432_v35 }
  0x52   :  { %351 = vmatpush.msrb.mxu3 %v1444_v37 }
  0x54   :  { %352 = vmatpush.msrb.mxu3 %v1461_v40 }
  0x56   :  { %353 = vmatpush.msrb.mxu3 %v1473_v42 }
  0x8e   :  { %v135_v43 = vpop.f32.mrf.mxu0 }
  0x8f   :  { %v144_v44 = vmax.f32 %v135_v43, 0.0  ;;  %v1078_v43 = vld [vmem:[%s2062_s0 + $0x28] sm:$0x3f] }
  0x91   :  { %163 = vmatmul.f32.vlgmr.msra.gmra.mxu1 %v144_v44  ;;  %189 = vmatmul.f32.vlgmr.msra.gmra.mxu2 %v144_v44  ;;  %v1636_v44 = vld [vmem:[%s2065_s3 + $0x98] sm:$0xff] }
  0x92   :  { %458 = vmatpush.msra.mxu2 %v1228_v0  ;;  %253 = vmatpush.msrb.mxu0 %v1636_v44 }
  0x93   :  { %417 = vmatpush.msra.mxu1 %v1636_v44 }
  0x94   :  { %459 = vmatpush.msra.mxu2 %v1233_v1 }
  0x96   :  { %v138_v45 = vpop.f32.mrf.mxu0  ;;  %460 = vmatpush.msra.mxu2 %v1239_v2 }
  0x97   :  { %v145_v46 = vmax.f32 %v138_v45, 0.0  ;;  %v1643_v45 = vld [vmem:[%s2065_s3 + $0x90] sm:$0xff] }
  0x98   :  { %461 = vmatpush.msra.mxu2 %v1245_v3  ;;  %254 = vmatpush.msrb.mxu0 %v1643_v45 }
  0x99   :  { %166 = vmatmul.f32.gmra.mxu1 %v145_v46  ;;  %192 = vmatmul.f32.gmra.mxu2 %v145_v46  ;;  %v1650_v46 = vld [vmem:[%s2065_s3 + $0x88] sm:$0xff] }
  0x9a   :  { %462 = vmatpush.msra.mxu2 %v1278_v9  ;;  %418 = vmatpush.msra.mxu1 %v1643_v45 }
  0x9b   :  { %255 = vmatpush.msrb.mxu0 %v1650_v46 }
  0x9c   :  { %463 = vmatpush.msra.mxu2 %v1296_v12  ;;  %419 = vmatpush.msra.mxu1 %v1650_v46 }
  0x9e   :  { %v141_v51 = vpop.f32.mrf.mxu0  ;;  %464 = vmatpush.msra.mxu2 %v1314_v15 }
  0x9f   :  { %v146_v52 = vmax.f32 %v141_v51, 0.0  ;;  %v1657_v51 = vld [vmem:[%s2065_s3 + $0x80] sm:$0xff] }
  0xa0   :  { %465 = vmatpush.msra.mxu2 %v1326_v17  ;;  %256 = vmatpush.msrb.mxu0 %v1657_v51 }
  0xa1   :  { %169 = vmatmul.f32.gmra.mxu1 %v146_v52  ;;  %195 = vmatmul.f32.gmra.mxu2 %v146_v52 }
  0xa2   :  { %420 = vmatpush.msra.mxu1 %v1657_v51  ;;  %379 = vmatpush.msra.mxu0 %v1508_v47 }
  0xa4   :  { %380 = vmatpush.msra.mxu0 %v1513_v48 }
  0xa6   :  { %381 = vmatpush.msra.mxu0 %v1520_v49 }
  0xa8   :  { %382 = vmatpush.msra.mxu0 %v1527_v50 }
  0xa9   :  { %1079 = vmatmul.msk.f32.vlgmr.msrb.gmra.mxu1 %vm108_vm0, %v1076_v57 }
  0xaa   :  { %546 = vmatpush.msrb.mxu1 %v1508_v47  ;;  %383 = vmatpush.msra.mxu0 %v1534_v53 }
  0xac   :  { %547 = vmatpush.msrb.mxu1 %v1513_v48  ;;  %384 = vmatpush.msra.mxu0 %v1541_v54 }
  0xae   :  { %548 = vmatpush.msrb.mxu1 %v1520_v49  ;;  %385 = vmatpush.msra.mxu0 %v1547_v55 }
  0xb0   :  { %549 = vmatpush.msrb.mxu1 %v1527_v50  ;;  %386 = vmatpush.msra.mxu0 %v1553_v56 }
  0xb1   :  { %1080 = vmatmul.msk.f32.gmra.mxu1 %vm108_vm0, %v1077_v62 }
  0xb2   :  { %550 = vmatpush.msrb.mxu1 %v1534_v53  ;;  %387 = vmatpush.msra.mxu0 %v1562_v58 }
  0xb4   :  { %551 = vmatpush.msrb.mxu1 %v1541_v54  ;;  %388 = vmatpush.msra.mxu0 %v1569_v59 }
  0xb6   :  { %552 = vmatpush.msrb.mxu1 %v1547_v55  ;;  %389 = vmatpush.msra.mxu0 %v1575_v60 }
  0xb8   :  { %553 = vmatpush.msrb.mxu1 %v1553_v56  ;;  %390 = vmatpush.msra.mxu0 %v1581_v61 }
  0xb9   :  { %1081 = vmatmul.msk.f32.gmra.mxu1 %vm108_vm0, %v1078_v43 }
  0xba   :  { %554 = vmatpush.msrb.mxu1 %v1562_v58  ;;  %391 = vmatpush.msra.mxu0 %v1590_v63 }
  0xbc   :  { %555 = vmatpush.msrb.mxu1 %v1569_v59  ;;  %392 = vmatpush.msra.mxu0 %v1597_v19 }
  0xbe   :  { %556 = vmatpush.msrb.mxu1 %v1575_v60  ;;  %393 = vmatpush.msra.mxu0 %v1603_v29 }
  0xc0   :  { %557 = vmatpush.msrb.mxu1 %v1581_v61  ;;  %394 = vmatpush.msra.mxu0 %v1609_v38 }
  0xc2   :  { %558 = vmatpush.msrb.mxu1 %v1590_v63 }
  0xc4   :  { %559 = vmatpush.msrb.mxu1 %v1597_v19 }
  0xc6   :  { %560 = vmatpush.msrb.mxu1 %v1603_v29 }
  0xc8   :  { %561 = vmatpush.msrb.mxu1 %v1609_v38 }
 0x10e   :  { %v164_v52 = vpop.f32.mrf.mxu1 }
 0x10f   :  { %v199_v57 = vmax.f32 %v164_v52, 0.0 }
 0x111   :  { %231 = vmatmul.f32.vlgmr.msra.gmra.mxu3 %v199_v57 }
 0x112   :  { %479 = vmatpush.msra.mxu3 %v1250_v4 }
 0x114   :  { %v190_v62 = vpop.f32.mrf.mxu2  ;;  %480 = vmatpush.msra.mxu3 %v1261_v6 }
 0x115   :  { %v200_v43 = vmax.f32 %v190_v62, 0.0 }
 0x116   :  { %v167_v52 = vpop.f32.mrf.mxu1  ;;  %481 = vmatpush.msra.mxu3 %v1273_v8 }
 0x117   :  { %v201_v57 = vmax.f32 %v167_v52, 0.0  ;;  %1073 = vmatmul.msk.f32.vlgmr.msrb.gmra.mxu0 %vm205_vm1, %v200_v43 }
 0x118   :  { %505 = vmatpush.msrb.mxu0 %v1256_v5  ;;  %482 = vmatpush.msra.mxu3 %v1291_v11 }
 0x119   :  { %234 = vmatmul.f32.gmra.mxu3 %v201_v57 }
 0x11a   :  { %506 = vmatpush.msrb.mxu0 %v1266_v7  ;;  %483 = vmatpush.msra.mxu3 %v1309_v14 }
 0x11c   :  { %v193_v62 = vpop.f32.mrf.mxu2  ;;  %507 = vmatpush.msrb.mxu0 %v1284_v10  ;;  %484 = vmatpush.msra.mxu3 %v1332_v18 }
 0x11d   :  { %v202_v8 = vmax.f32 %v193_v62, 0.0 }
 0x11e   :  { %v170_v6 = vpop.f32.mrf.mxu1  ;;  %508 = vmatpush.msrb.mxu0 %v1302_v13  ;;  %485 = vmatpush.msra.mxu3 %v1346_v21 }
 0x11f   :  { %v203_v43 = vmax.f32 %v170_v6, 0.0  ;;  %1074 = vmatmul.msk.f32.gmra.mxu0 %vm205_vm1, %v202_v8 }
 0x120   :  { %509 = vmatpush.msrb.mxu0 %v1320_v16  ;;  %486 = vmatpush.msra.mxu3 %v1361_v23 }
 0x121   :  { %237 = vmatmul.f32.gmra.mxu3 %v203_v43 }
 0x122   :  { %510 = vmatpush.msrb.mxu0 %v1341_v20  ;;  %487 = vmatpush.msra.mxu3 %v1374_v25 }
 0x124   :  { %v196_v52 = vpop.f32.mrf.mxu2  ;;  %511 = vmatpush.msrb.mxu0 %v1354_v22  ;;  %488 = vmatpush.msra.mxu3 %v1386_v27 }
 0x125   :  { %v204_v57 = vmax.f32 %v196_v52, 0.0 }
 0x126   :  { %v300_v62 = vpop.f32.mrf.mxu1  ;;  %512 = vmatpush.msrb.mxu0 %v1368_v24  ;;  %489 = vmatpush.msra.mxu3 %v1401_v30 }
 0x127   :  { %v309_v6 = vmax.f32 %v300_v62, 0.0  ;;  %1075 = vmatmul.msk.f32.gmra.mxu0 %vm205_vm1, %v204_v57 }
 0x128   :  { %513 = vmatpush.msrb.mxu0 %v1380_v26  ;;  %490 = vmatpush.msra.mxu3 %v1413_v32 }
 0x129   :  { %328 = vmatmul.f32.vlgmr.msrb.gmra.mxu2 %v309_v6  ;;  %354 = vmatmul.f32.vlgmr.msrb.gmra.mxu3 %v309_v6 }
 0x12a   :  { %514 = vmatpush.msrb.mxu0 %v1392_v28  ;;  %491 = vmatpush.msra.mxu3 %v1426_v34 }
 0x12b   :  { %584 = vmatpush.msrb.mxu2 %v1636_v44 }
 0x12c   :  { %515 = vmatpush.msrb.mxu0 %v1407_v31  ;;  %492 = vmatpush.msra.mxu3 %v1438_v36 }
 0x12d   :  { %585 = vmatpush.msrb.mxu2 %v1643_v45 }
 0x12e   :  { %v303_v8 = vpop.f32.mrf.mxu1  ;;  %516 = vmatpush.msrb.mxu0 %v1420_v33  ;;  %493 = vmatpush.msra.mxu3 %v1456_v39 }
 0x12f   :  { %v310_v43 = vmax.f32 %v303_v8, 0.0  ;;  %586 = vmatpush.msrb.mxu2 %v1650_v46 }
 0x130   :  { %517 = vmatpush.msrb.mxu0 %v1432_v35  ;;  %494 = vmatpush.msra.mxu3 %v1468_v41 }
 0x131   :  { %331 = vmatmul.f32.gmra.mxu2 %v310_v43  ;;  %357 = vmatmul.f32.gmra.mxu3 %v310_v43 }
 0x132   :  { %518 = vmatpush.msrb.mxu0 %v1444_v37  ;;  %625 = vmatpush.msrb.mxu3 %v1228_v0  ;;  %v1085_v0 = vld [vmem:[%s2062_s0 + $0x30] sm:$0xff] }
 0x133   :  { %587 = vmatpush.msrb.mxu2 %v1657_v51 }
 0x134   :  { %519 = vmatpush.msrb.mxu0 %v1461_v40  ;;  %626 = vmatpush.msrb.mxu3 %v1233_v1  ;;  %v1086_v1 = vld [vmem:[%s2062_s0 + $0x38] sm:$0xff] }
 0x136   :  { %v306_v52 = vpop.f32.mrf.mxu1  ;;  %520 = vmatpush.msrb.mxu0 %v1473_v42  ;;  %627 = vmatpush.msrb.mxu3 %v1239_v2  ;;  %v1087_v2 = vld [vmem:[%s2062_s0 + $0x40] sm:$0x3f] }
 0x137   :  { %v311_v57 = vmax.f32 %v306_v52, 0.0 }
 0x138   :  { %628 = vmatpush.msrb.mxu3 %v1245_v3 }
 0x139   :  { %334 = vmatmul.f32.gmra.mxu2 %v311_v57  ;;  %360 = vmatmul.f32.gmra.mxu3 %v311_v57 }
 0x13a   :  { %629 = vmatpush.msrb.mxu3 %v1278_v9 }
 0x13c   :  { %630 = vmatpush.msrb.mxu3 %v1296_v12 }
 0x13e   :  { %631 = vmatpush.msrb.mxu3 %v1314_v15 }
 0x140   :  { %632 = vmatpush.msrb.mxu3 %v1326_v17 }
 0x141   :  { %1088 = vmatmul.msk.f32.vlgmr.msra.gmra.mxu2 %vm108_vm0, %v1085_v0 }
 0x142   :  { %713 = vmatpush.msra.mxu2 %v1508_v47 }
 0x144   :  { %714 = vmatpush.msra.mxu2 %v1513_v48 }
 0x146   :  { %715 = vmatpush.msra.mxu2 %v1520_v49 }
 0x148   :  { %716 = vmatpush.msra.mxu2 %v1527_v50 }
 0x149   :  { %1089 = vmatmul.msk.f32.gmra.mxu2 %vm108_vm0, %v1086_v1 }
 0x14a   :  { %717 = vmatpush.msra.mxu2 %v1534_v53 }
 0x14c   :  { %718 = vmatpush.msra.mxu2 %v1541_v54 }
 0x14e   :  { %719 = vmatpush.msra.mxu2 %v1547_v55  ;;  %v2080_v55 = vld [vmem:[#allocation5_spill] sm:$0xff] }
 0x150   :  { %720 = vmatpush.msra.mxu2 %v1553_v56 }
 0x151   :  { %1090 = vmatmul.msk.f32.gmra.mxu2 %vm108_vm0, %v1087_v2 }
 0x152   :  { %721 = vmatpush.msra.mxu2 %v1562_v58 }
 0x154   :  { %722 = vmatpush.msra.mxu2 %v1569_v59  ;;  %v2081_v59 = vld [vmem:[#allocation6_spill] sm:$0xff] }
 0x156   :  { %723 = vmatpush.msra.mxu2 %v1575_v60 }
 0x158   :  { %724 = vmatpush.msra.mxu2 %v1581_v61 }
 0x15a   :  { %725 = vmatpush.msra.mxu2 %v1590_v63 }
 0x15c   :  { %726 = vmatpush.msra.mxu2 %v1597_v19 }
 0x15e   :  { %727 = vmatpush.msra.mxu2 %v1603_v29 }
 0x160   :  { %728 = vmatpush.msra.mxu2 %v1609_v38 }
 0x194   :  { %v232_v3 = vpop.f32.mrf.mxu3  ;;  %v258_v9 = vpop.f32.mrf.mxu0 }
 0x195   :  { %v1768_v12 = vadd.f32 %v258_v9, %v232_v3 }
 0x19c   :  { %v235_v15 = vpop.f32.mrf.mxu3  ;;  %v261_v17 = vpop.f32.mrf.mxu0 }
 0x19d   :  { %v1770_v47 = vadd.f32 %v261_v17, %v235_v15 }
 0x1a4   :  { %v1772_v48 = vpop.f32.mrf.mxu3 }
 0x1ac   :  { %v329_v49 = vpop.f32.mrf.mxu2  ;;  %v355_v50 = vpop.f32.mrf.mxu3 }
 0x1ad   :  { %v364_v53 = vmax.f32 %v329_v49, 0.0  ;;  %v365_v54 = vmax.f32 %v355_v50, 0.0 }
 0x1af   :  { %395 = vmatmul.f32.vlgmr.msra.gmra.mxu0 %v364_v53  ;;  %1082 = vmatmul.msk.f32.vlgmr.msra.gmra.mxu1 %vm205_vm1, %v365_v54 }
 0x1b0   :  { %646 = vmatpush.msra.mxu0 %v1250_v4  ;;  %672 = vmatpush.msra.mxu1 %v1256_v5 }
 0x1b2   :  { %647 = vmatpush.msra.mxu0 %v2080_v55  ;;  %673 = vmatpush.msra.mxu1 %v1266_v7 }
 0x1b4   :  { %v332_v56 = vpop.f32.mrf.mxu2  ;;  %v358_v58 = vpop.f32.mrf.mxu3  ;;  %648 = vmatpush.msra.mxu0 %v2081_v59  ;;  %674 = vmatpush.msra.mxu1 %v1284_v10  ;;  %v805_v59 = vld [vmem:[%s2066_s4 + $0xf8] sm:$0xff] }
 0x1b5   :  { %v366_v60 = vmax.f32 %v332_v56, 0.0  ;;  %v367_v61 = vmax.f32 %v358_v58, 0.0  ;;  %v804_v58 = vld [vmem:[%s2066_s4 + $0xf0] sm:$0xff] }
 0x1b6   :  { %649 = vmatpush.msra.mxu0 %v1291_v11  ;;  %675 = vmatpush.msra.mxu1 %v1302_v13 }
 0x1b7   :  { %398 = vmatmul.f32.gmra.mxu0 %v366_v60  ;;  %1083 = vmatmul.msk.f32.gmra.mxu1 %vm205_vm1, %v367_v61  ;;  %v802_v60 = vld [vmem:[%s2066_s4 + $0xe0] sm:$0xff]  ;;  %v803_v61 = vld [vmem:[%s2066_s4 + $0xe8] sm:$0xff] }
 0x1b8   :  { %650 = vmatpush.msra.mxu0 %v1309_v14  ;;  %676 = vmatpush.msra.mxu1 %v1320_v16 }
 0x1ba   :  { %651 = vmatpush.msra.mxu0 %v1332_v18  ;;  %677 = vmatpush.msra.mxu1 %v1341_v20 }
 0x1bc   :  { %v335_v4 = vpop.f32.mrf.mxu2  ;;  %v361_v5 = vpop.f32.mrf.mxu3  ;;  %652 = vmatpush.msra.mxu0 %v1346_v21  ;;  %678 = vmatpush.msra.mxu1 %v1354_v22  ;;  %v1094_v21 = vld [vmem:[%s2062_s0 + $0x48] sm:$0xff]  ;;  %v1095_v22 = vld [vmem:[%s2062_s0 + $0x50] sm:$0xff] }
 0x1bd   :  { %v368_v7 = vmax.f32 %v335_v4, 0.0  ;;  %v369_v10 = vmax.f32 %v361_v5, 0.0  ;;  %v800_v5 = vld [vmem:[%s2066_s4 + $0xd0] sm:$0xff] }
 0x1be   :  { %653 = vmatpush.msra.mxu0 %v1361_v23  ;;  %679 = vmatpush.msra.mxu1 %v1368_v24  ;;  %v1096_v23 = vld [vmem:[%s2062_s0 + $0x58] sm:$0x3f]  ;;  %v264_v24 = vpop.f32.mrf.mxu0 }
 0x1bf   :  { %401 = vmatmul.f32.gmra.mxu0 %v368_v7  ;;  %1084 = vmatmul.msk.f32.gmra.mxu1 %vm205_vm1, %v369_v10  ;;  %v801_v7 = vld [vmem:[%s2066_s4 + $0xd8] sm:$0xff]  ;;  %v798_v10 = vld [vmem:[%s2066_s4 + $0xc0] sm:$0xff] }
 0x1c0   :  { %654 = vmatpush.msra.mxu0 %v1374_v25  ;;  %680 = vmatpush.msra.mxu1 %v1380_v26 }
 0x1c2   :  { %655 = vmatpush.msra.mxu0 %v1386_v27  ;;  %681 = vmatpush.msra.mxu1 %v1392_v28  ;;  %v267_v28 = vmax.f32 %v1768_v12, 0.0 }
 0x1c4   :  { %v467_v11 = vpop.f32.mrf.mxu2  ;;  %656 = vmatpush.msra.mxu0 %v1401_v30  ;;  %682 = vmatpush.msra.mxu1 %v1407_v31 }
 0x1c5   :  { %v476_v13 = vmax.f32 %v467_v11, 0.0  ;;  %v799_v11 = vld [vmem:[%s2066_s4 + $0xc8] sm:$0xff] }
 0x1c6   :  { %657 = vmatpush.msra.mxu0 %v1413_v32  ;;  %683 = vmatpush.msra.mxu1 %v1420_v33 }
 0x1c7   :  { %495 = vmatmul.f32.vlgmr.msra.gmra.mxu3 %v476_v13  ;;  %521 = vmatmul.f32.vlgmr.msrb.gmra.mxu0 %v476_v13 }
 0x1c8   :  { %658 = vmatpush.msra.mxu0 %v1426_v34  ;;  %684 = vmatpush.msra.mxu1 %v1432_v35  ;;  %v268_v35 = vmax.f32 %v1770_v47, 0.0 }
 0x1c9   :  { %751 = vmatpush.msra.mxu3 %v1636_v44 }
 0x1ca   :  { %659 = vmatpush.msra.mxu0 %v1438_v36  ;;  %685 = vmatpush.msra.mxu1 %v1444_v37 }
 0x1cb   :  { %752 = vmatpush.msra.mxu3 %v1643_v45 }
 0x1cc   :  { %v470_v14 = vpop.f32.mrf.mxu2  ;;  %660 = vmatpush.msra.mxu0 %v1456_v39  ;;  %686 = vmatpush.msra.mxu1 %v1461_v40  ;;  %v265_v39 = vadd.f32 %v264_v24, %v1772_v48 }
 0x1cd   :  { %v477_v16 = vmax.f32 %v470_v14, 0.0  ;;  %753 = vmatpush.msra.mxu3 %v1650_v46 }
 0x1ce   :  { %661 = vmatpush.msra.mxu0 %v1468_v41  ;;  %687 = vmatpush.msra.mxu1 %v1473_v42  ;;  %v269_v63 = vmax.f32 %v265_v39, 0.0  ;;  %v784_v39 = vld [vmem:[%s2066_s4 + $0x50] sm:$0xff] }
 0x1cf   :  { %498 = vmatmul.f32.gmra.mxu3 %v477_v16  ;;  %524 = vmatmul.f32.gmra.mxu0 %v477_v16 }
 0x1d0   :  { %754 = vmatpush.msra.mxu3 %v1657_v51  ;;  %812 = vmatpush.msrb.mxu0 %v804_v58  ;;  %v878_v58 = vld [vmem:[%s2068_s6 + $0x40] sm:$0xff] }
 0x1d2   :  { %813 = vmatpush.msrb.mxu0 %v802_v60  ;;  %v877_v60 = vld [vmem:[%s2068_s6 + $0x38] sm:$0xff] }
 0x1d4   :  { %v473_v18 = vpop.f32.mrf.mxu2  ;;  %814 = vmatpush.msrb.mxu0 %v800_v5 }
 0x1d5   :  { %v478_v20 = vmax.f32 %v473_v18, 0.0  ;;  %v796_v18 = vld [vmem:[%s2066_s4 + $0xb0] sm:$0xff] }
 0x1d6   :  { %815 = vmatpush.msrb.mxu0 %v798_v10 }
 0x1d7   :  { %501 = vmatmul.f32.gmra.mxu3 %v478_v20  ;;  %527 = vmatmul.f32.gmra.mxu0 %v478_v20  ;;  %v797_v20 = vld [vmem:[%s2066_s4 + $0xb8] sm:$0xff] }
 0x1d8   :  { %816 = vmatpush.msrb.mxu0 %v796_v18  ;;  %v873_v18 = vld [vmem:[%s2068_s6 + $0x18] sm:$0xff] }
 0x1df   :  { %1097 = vmatmul.msk.f32.vlgmr.msrb.gmra.mxu3 %vm108_vm0, %v1094_v21 }
 0x1e7   :  { %1098 = vmatmul.msk.f32.gmra.mxu3 %vm108_vm0, %v1095_v22  ;;  %v794_v22 = vld [vmem:[%s2066_s4 + $0xa0] sm:$0xff] }
 0x1e8   :  { %817 = vmatpush.msrb.mxu0 %v794_v22 }
 0x1ef   :  { %1099 = vmatmul.msk.f32.gmra.mxu3 %vm108_vm0, %v1096_v23  ;;  %v795_v23 = vld [vmem:[%s2066_s4 + $0xa8] sm:$0xff] }
 0x22c   :  { %v396_v25 = vpop.f32.mrf.mxu0  ;;  %v422_v26 = vpop.f32.mrf.mxu1 }
 0x22d   :  { %v423_v27 = vadd.f32 %v422_v26, %v396_v25  ;;  %v792_v25 = vld [vmem:[%s2066_s4 + $0x90] sm:$0xff]  ;;  %v793_v26 = vld [vmem:[%s2066_s4 + $0x98] sm:$0xff] }
 0x22e   :  { %818 = vmatpush.msrb.mxu0 %v792_v25 }
 0x22f   :  { %v431_v30 = vmax.f32 %v423_v27, 0.0  ;;  %v790_v27 = vld [vmem:[%s2066_s4 + $0x80] sm:$0xff] }
 0x230   :  { %819 = vmatpush.msrb.mxu0 %v790_v27  ;;  %v888_v27 = vld [vmem:[%s2068_s6 + $0x90] sm:$0xff] }
 0x231   :  { %v434_v31 = vadd.f32 %v431_v30, %v267_v28  ;;  %v791_v28 = vld [vmem:[%s2066_s4 + $0x88] sm:$0xff] }
 0x234   :  { %v399_v32 = vpop.f32.mrf.mxu0  ;;  %v425_v33 = vpop.f32.mrf.mxu1 }
 0x235   :  { %v426_v34 = vadd.f32 %v425_v33, %v399_v32 }
 0x237   :  { %v432_v36 = vmax.f32 %v426_v34, 0.0  ;;  %v788_v34 = vld [vmem:[%s2066_s4 + $0x70] sm:$0xff] }
 0x238   :  { %820 = vmatpush.msrb.mxu0 %v788_v34  ;;  %v967_v34 = vld [vmem:[%s2070_s8 + $0x48] sm:$0xff] }
 0x239   :  { %v435_v37 = vadd.f32 %v432_v36, %v268_v35  ;;  %v789_v35 = vld [vmem:[%s2066_s4 + $0x78] sm:$0xff]  ;;  %v786_v36 = vld [vmem:[%s2066_s4 + $0x60] sm:$0xff] }
 0x23a   :  { %821 = vmatpush.msrb.mxu0 %v786_v36  ;;  %v806_v36 = vld [vmem:[%s2067_s5] sm:$0x3] }
 0x23c   :  { %v402_v40 = vpop.f32.mrf.mxu0  ;;  %v428_v41 = vpop.f32.mrf.mxu1  ;;  %822 = vmatpush.msrb.mxu0 %v784_v39  ;;  %v808_v39 = vperm.slane %v806_v36, 0 }
 0x23d   :  { %v429_v42 = vadd.f32 %v428_v41, %v402_v40  ;;  %v785_v40 = vld [vmem:[%s2066_s4 + $0x58] sm:$0xff] }
 0x23f   :  { %v433_v19 = vmax.f32 %v429_v42, 0.0 }
 0x241   :  { %v1828_v29 = vadd.f32 %v433_v19, %v269_v63 }
 0x244   :  { %v522_v38 = vpop.f32.mrf.mxu0 }
 0x245   :  { %v532_v44 = vmax.f32 %v522_v38, 0.0 }
 0x247   :  { %1091 = vmatmul.msk.f32.vlgmr.msrb.gmra.mxu2 %vm205_vm1, %v532_v44 }
 0x24a   :  { %v496_v45 = vpop.f32.mrf.mxu3 }
 0x24b   :  { %v531_v46 = vmax.f32 %v496_v45, 0.0 }
 0x24c   :  { %v525_v51 = vpop.f32.mrf.mxu0 }
 0x24d   :  { %v534_v62 = vmax.f32 %v525_v51, 0.0  ;;  %562 = vmatmul.f32.vlgmr.msrb.gmra.mxu1 %v531_v46  ;;  %v782_v46 = vld [vmem:[%s2066_s4 + $0x40] sm:$0xff]  ;;  %v783_v51 = vld [vmem:[%s2066_s4 + $0x48] sm:$0xff] }
 0x24e   :  { %838 = vmatpush.msrb.mxu1 %v805_v59  ;;  %823 = vmatpush.msrb.mxu0 %v782_v46 }
 0x24f   :  { %1092 = vmatmul.msk.f32.gmra.mxu2 %vm205_vm1, %v534_v62  ;;  %v780_v62 = vld [vmem:[%s2066_s4 + $0x30] sm:$0xff] }
 0x250   :  { %839 = vmatpush.msrb.mxu1 %v803_v61  ;;  %824 = vmatpush.msrb.mxu0 %v780_v62 }
 0x252   :  { %v499_v6 = vpop.f32.mrf.mxu3  ;;  %840 = vmatpush.msrb.mxu1 %v801_v7 }
 0x253   :  { %v533_v8 = vmax.f32 %v499_v6, 0.0  ;;  %v781_v6 = vld [vmem:[%s2066_s4 + $0x38] sm:$0xff] }
 0x254   :  { %v528_v43 = vpop.f32.mrf.mxu0  ;;  %841 = vmatpush.msrb.mxu1 %v799_v11  ;;  %v875_v11 = vld [vmem:[%s2068_s6 + $0x28] sm:$0xff] }
 0x255   :  { %v536_v52 = vmax.f32 %v528_v43, 0.0  ;;  %565 = vmatmul.f32.gmra.mxu1 %v533_v8  ;;  %v778_v8 = vld [vmem:[%s2066_s4 + $0x20] sm:$0xff]  ;;  %v779_v43 = vld [vmem:[%s2066_s4 + $0x28] sm:$0xff] }
 0x256   :  { %842 = vmatpush.msrb.mxu1 %v797_v20  ;;  %825 = vmatpush.msrb.mxu0 %v778_v8 }
 0x257   :  { %1093 = vmatmul.msk.f32.gmra.mxu2 %vm205_vm1, %v536_v52  ;;  %v776_v52 = vld [vmem:[%s2066_s4 + $0x10] sm:$0xff] }
 0x258   :  { %843 = vmatpush.msrb.mxu1 %v795_v23  ;;  %826 = vmatpush.msrb.mxu0 %v776_v52 }
 0x25a   :  { %v502_v57 = vpop.f32.mrf.mxu3  ;;  %844 = vmatpush.msrb.mxu1 %v793_v26  ;;  %v872_v26 = vld [vmem:[%s2068_s6 + $0x10] sm:$0xff] }
 0x25b   :  { %v535_v0 = vmax.f32 %v502_v57, 0.0  ;;  %v777_v57 = vld [vmem:[%s2066_s4 + $0x18] sm:$0xff] }
 0x25c   :  { %845 = vmatpush.msrb.mxu1 %v791_v28  ;;  %v871_v28 = vld [vmem:[%s2068_s6 + $0x8] sm:$0xff] }
 0x25d   :  { %568 = vmatmul.f32.gmra.mxu1 %v535_v0  ;;  %v774_v0 = vld [vmem:[%s2066_s4] sm:$0xff] }
 0x25e   :  { %846 = vmatpush.msrb.mxu1 %v789_v35  ;;  %827 = vmatpush.msrb.mxu0 %v774_v0  ;;  %v966_v35 = vld [vmem:[%s2070_s8 + $0x40] sm:$0xff] }
 0x262   :  { %v634_v1 = vpop.f32.mrf.mxu3 }
 0x263   :  { %v643_v2 = vmax.f32 %v634_v1, 0.0  ;;  %v775_v1 = vld [vmem:[%s2066_s4 + $0x8] sm:$0xff] }
 0x265   :  { %662 = vmatmul.f32.vlgmr.msra.gmra.mxu0 %v643_v2  ;;  %688 = vmatmul.f32.vlgmr.msra.gmra.mxu1 %v643_v2  ;;  %v885_v2 = vld [vmem:[%s2068_s6 + $0x78] sm:$0xff] }
 0x266   :  { %903 = vmatpush.msrb.mxu2 %v885_v2 }
 0x26a   :  { %v637_v3 = vpop.f32.mrf.mxu3 }
 0x26b   :  { %v644_v9 = vmax.f32 %v637_v3, 0.0  ;;  %v884_v3 = vld [vmem:[%s2068_s6 + $0x70] sm:$0xff] }
 0x26c   :  { %904 = vmatpush.msrb.mxu2 %v884_v3 }
 0x26d   :  { %665 = vmatmul.f32.gmra.mxu0 %v644_v9  ;;  %691 = vmatmul.f32.gmra.mxu1 %v644_v9  ;;  %v883_v9 = vld [vmem:[%s2068_s6 + $0x68] sm:$0xff] }
 0x26e   :  { %905 = vmatpush.msrb.mxu2 %v883_v9 }
 0x272   :  { %v640_v12 = vpop.f32.mrf.mxu3 }
 0x273   :  { %v645_v15 = vmax.f32 %v640_v12, 0.0  ;;  %v882_v12 = vld [vmem:[%s2068_s6 + $0x60] sm:$0xff] }
 0x274   :  { %906 = vmatpush.msrb.mxu2 %v882_v12  ;;  %v961_v12 = vld [vmem:[%s2070_s8 + $0x18] sm:$0xff] }
 0x275   :  { %668 = vmatmul.f32.gmra.mxu0 %v645_v15  ;;  %694 = vmatmul.f32.gmra.mxu1 %v645_v15  ;;  %v889_v15 = vld [vmem:[%s2068_s6 + $0x98] sm:$0xff] }
 0x276   :  { %941 = vmatpush.msrb.mxu3 %v889_v15  ;;  %v960_v15 = vld [vmem:[%s2070_s8 + $0x10] sm:$0xff] }
 0x278   :  { %942 = vmatpush.msrb.mxu3 %v888_v27  ;;  %v1013_v27 = vld [vmem:[%s2074_s12] sm:$0x3] }
 0x2ca   :  { %v563_v17 = vpop.f32.mrf.mxu1  ;;  %v589_v47 = vpop.f32.mrf.mxu2 }
 0x2cb   :  { %v590_v48 = vadd.f32 %v589_v47, %v563_v17  ;;  %v881_v17 = vld [vmem:[%s2068_s6 + $0x58] sm:$0xff] }
 0x2cc   :  { %907 = vmatpush.msrb.mxu2 %v881_v17  ;;  %v959_v17 = vld [vmem:[%s2070_s8 + $0x8] sm:$0xff] }
 0x2cd   :  { %v598_v49 = vmax.f32 %v590_v48, 0.0 }
 0x2cf   :  { %v1833_v50 = vadd.f32 %v598_v49, %v434_v31 }
 0x2d2   :  { %v566_v53 = vpop.f32.mrf.mxu1  ;;  %v592_v54 = vpop.f32.mrf.mxu2 }
 0x2d3   :  { %v593_v55 = vadd.f32 %v592_v54, %v566_v53  ;;  %v880_v53 = vld [vmem:[%s2068_s6 + $0x50] sm:$0xff] }
 0x2d4   :  { %908 = vmatpush.msrb.mxu2 %v880_v53 }
 0x2d5   :  { %v599_v56 = vmax.f32 %v593_v55, 0.0  ;;  %v879_v55 = vld [vmem:[%s2068_s6 + $0x48] sm:$0xff] }
 0x2d6   :  { %909 = vmatpush.msrb.mxu2 %v879_v55 }
 0x2d7   :  { %v1847_v4 = vadd.f32 %v599_v56, %v435_v37  ;;  %v787_v37 = vld [vmem:[%s2066_s4 + $0x68] sm:$0xff]  ;;  %s1061_s4 = sshll.u32 %s2075_s13, 4  ;;  %s1062_s4 = int_to_ptr.hbm [resolvable:$true] %s1061_s4 }
 0x2d8   :  { %847 = vmatpush.msrb.mxu1 %v787_v37  ;;  %910 = vmatpush.msrb.mxu2 %v878_v58  ;;  %v965_v37 = vld [vmem:[%s2070_s8 + $0x38] sm:$0xff] }
 0x2da   :  { %v569_v13 = vpop.f32.mrf.mxu1  ;;  %v595_v14 = vpop.f32.mrf.mxu2  ;;  %848 = vmatpush.msrb.mxu1 %v785_v40  ;;  %911 = vmatpush.msrb.mxu2 %v877_v60  ;;  %v809_v40 = vperm.slane %v806_v36, 1 }
 0x2db   :  { %v596_v16 = vadd.f32 %v595_v14, %v569_v13  ;;  %v874_v14 = vld [vmem:[%s2068_s6 + $0x20] sm:$0xff] }
 0x2dc   :  { %849 = vmatpush.msrb.mxu1 %v783_v51 }
 0x2dd   :  { %v600_v21 = vmax.f32 %v596_v16, 0.0 }
 0x2de   :  { %850 = vmatpush.msrb.mxu1 %v781_v6 }
 0x2df   :  { %v1874_v24 = vadd.f32 %v600_v21, %v1828_v29 }
 0x2e0   :  { %851 = vmatpush.msrb.mxu1 %v779_v43 }
 0x2e2   :  { %v663_v30 = vpop.f32.mrf.mxu0  ;;  %v689_v31 = vpop.f32.mrf.mxu1  ;;  %852 = vmatpush.msrb.mxu1 %v777_v57 }
 0x2e3   :  { %v698_v32 = vmax.f32 %v663_v30, 0.0  ;;  %v699_v33 = vmax.f32 %v689_v31, 0.0  ;;  %v870_v30 = vld [vmem:[%s2068_s6] sm:$0xff] }
 0x2e4   :  { %853 = vmatpush.msrb.mxu1 %v775_v1  ;;  %v886_v31 = vld [vmem:[%s2068_s6 + $0x80] sm:$0xff] }
 0x2e5   :  { %729 = vmatmul.f32.vlgmr.msra.gmra.mxu2 %v698_v32  ;;  %1100 = vmatmul.msk.f32.vlgmr.msra.gmra.mxu3 %vm205_vm1, %v699_v33  ;;  %v969_v32 = vld [vmem:[%s2070_s8 + $0x58] sm:$0xff]  ;;  %v968_v33 = vld [vmem:[%s2070_s8 + $0x50] sm:$0xff] }
 0x2e6   :  { %988 = vmatpush.msra.mxu0 %v969_v32  ;;  %1111 = vmatpush.msra.mxu1 %v969_v32 }
 0x2e8   :  { %989 = vmatpush.msra.mxu0 %v968_v33  ;;  %1112 = vmatpush.msra.mxu1 %v968_v33 }
 0x2ea   :  { %v666_v41 = vpop.f32.mrf.mxu0  ;;  %v692_v42 = vpop.f32.mrf.mxu1  ;;  %990 = vmatpush.msra.mxu0 %v967_v34  ;;  %1113 = vmatpush.msra.mxu1 %v967_v34 }
 0x2eb   :  { %v700_v63 = vmax.f32 %v666_v41, 0.0  ;;  %v701_v19 = vmax.f32 %v692_v42, 0.0  ;;  %v964_v41 = vld [vmem:[%s2070_s8 + $0x30] sm:$0xff]  ;;  %v963_v42 = vld [vmem:[%s2070_s8 + $0x28] sm:$0xff] }
 0x2ec   :  { %991 = vmatpush.msra.mxu0 %v966_v35  ;;  %1114 = vmatpush.msra.mxu1 %v966_v35 }
 0x2ed   :  { %732 = vmatmul.f32.gmra.mxu2 %v700_v63  ;;  %1101 = vmatmul.msk.f32.gmra.mxu3 %vm205_vm1, %v701_v19 }
 0x2ee   :  { %992 = vmatpush.msra.mxu0 %v965_v37  ;;  %1115 = vmatpush.msra.mxu1 %v965_v37 }
 0x2f0   :  { %993 = vmatpush.msra.mxu0 %v964_v41  ;;  %1116 = vmatpush.msra.mxu1 %v964_v41 }
 0x2f2   :  { %v669_v29 = vpop.f32.mrf.mxu0  ;;  %v695_v38 = vpop.f32.mrf.mxu1  ;;  %994 = vmatpush.msra.mxu0 %v963_v42  ;;  %1117 = vmatpush.msra.mxu1 %v963_v42 }
 0x2f3   :  { %v702_v44 = vmax.f32 %v669_v29, 0.0  ;;  %v703_v45 = vmax.f32 %v695_v38, 0.0 }
 0x2f5   :  { %735 = vmatmul.f32.gmra.mxu2 %v702_v44  ;;  %1102 = vmatmul.msk.f32.gmra.mxu3 %vm205_vm1, %v703_v45  ;;  %v962_v44 = vld [vmem:[%s2070_s8 + $0x20] sm:$0xff] }
 0x2f6   :  { %995 = vmatpush.msra.mxu0 %v962_v44  ;;  %1118 = vmatpush.msra.mxu1 %v962_v44 }
 0x2f8   :  { %996 = vmatpush.msra.mxu0 %v961_v12  ;;  %1119 = vmatpush.msra.mxu1 %v961_v12 }
 0x2fa   :  { %997 = vmatpush.msra.mxu0 %v960_v15  ;;  %1120 = vmatpush.msra.mxu1 %v960_v15 }
 0x2fc   :  { %998 = vmatpush.msra.mxu0 %v959_v17  ;;  %1121 = vmatpush.msra.mxu1 %v959_v17 }
 0x368   :  { %v730_v47 = vpop.f32.mrf.mxu2  ;;  %v756_v48 = vpop.f32.mrf.mxu3 }
 0x369   :  { %v757_v49 = vadd.f32 %v756_v48, %v730_v47  ;;  %v958_v47 = vld [vmem:[%s2070_s8] sm:$0xff] }
 0x36a   :  { %999 = vmatpush.msra.mxu0 %v958_v47  ;;  %1122 = vmatpush.msra.mxu1 %v958_v47  ;;  %v1124_v48 = vld [vmem:[%s2069_s7] ss:$0 sm:$0xff] }
 0x36b   :  { %v765_v54 = vmax.f32 %v757_v49, 0.0 }
 0x36d   :  { %v768_v56 = vadd.f32 %v765_v54, %v1833_v50  ;;  %v876_v50 = vld [vmem:[%s2068_s6 + $0x30] sm:$0xff] }
 0x36e   :  { %912 = vmatpush.msrb.mxu2 %v876_v50 }
 0x36f   :  { %v771_v59 = vmul.f32 0.25, %v768_v56 }
 0x370   :  { %v733_v61 = vpop.f32.mrf.mxu2  ;;  %v759_v5 = vpop.f32.mrf.mxu3  ;;  %913 = vmatpush.msrb.mxu2 %v875_v11 }
 0x371   :  { %v760_v7 = vadd.f32 %v759_v5, %v733_v61  ;;  %828 = vmatmul.f32.vlgmr.msrb.gmra.mxu0 %v771_v59  ;;  %854 = vmatmul.f32.vlgmr.msrb.gmra.mxu1 %v771_v59 }
 0x372   :  { %914 = vmatpush.msrb.mxu2 %v874_v14 }
 0x373   :  { %v766_v10 = vmax.f32 %v760_v7, 0.0 }
 0x374   :  { %915 = vmatpush.msrb.mxu2 %v873_v18  ;;  %v1125_v18 = vld [vmem:[%s2071_s9] ss:$0 sm:$0xff] }
 0x375   :  { %v769_v13 = vadd.f32 %v766_v10, %v1847_v4 }
 0x376   :  { %916 = vmatpush.msrb.mxu2 %v872_v26 }
 0x377   :  { %v772_v16 = vmul.f32 0.25, %v769_v13 }
 0x378   :  { %v736_v20 = vpop.f32.mrf.mxu2  ;;  %v762_v21 = vpop.f32.mrf.mxu3  ;;  %917 = vmatpush.msrb.mxu2 %v871_v28  ;;  %v1126_v28 = vld [vmem:[%s2072_s10] ss:$0 sm:$0xff] }
 0x379   :  { %v763_v22 = vadd.f32 %v762_v21, %v736_v20  ;;  %831 = vmatmul.f32.gmra.mxu0 %v772_v16  ;;  %857 = vmatmul.f32.gmra.mxu1 %v772_v16 }
 0x37a   :  { %918 = vmatpush.msrb.mxu2 %v870_v30 }
 0x37b   :  { %v767_v23 = vmax.f32 %v763_v22, 0.0 }
 0x37d   :  { %v770_v4 = vadd.f32 %v767_v23, %v1874_v24  ;;  %v887_v24 = vld [vmem:[%s2068_s6 + $0x88] sm:$0xff] }
 0x37e   :  { %943 = vmatpush.msrb.mxu3 %v887_v24  ;;  %v1127_v24 = vld [vmem:[%s2073_s11] ss:$0 sm:$0xff] }
 0x37f   :  { %v773_v25 = vmul.f32 0.25, %v770_v4 }
 0x380   :  { %944 = vmatpush.msrb.mxu3 %v886_v31 }
 0x381   :  { %834 = vmatmul.f32.gmra.mxu0 %v773_v25  ;;  %860 = vmatmul.f32.gmra.mxu1 %v773_v25 }
 0x3ee   :  { %v829_v63 = vpop.f32.mrf.mxu0  ;;  %v855_v19 = vpop.f32.mrf.mxu1 }
 0x3ef   :  { %v830_v29 = vadd.f32 %v829_v63, %v808_v39  ;;  %v856_v38 = vadd.f32 %v855_v19, %v809_v40 }
 0x3f1   :  { %v864_v45 = vmax.f32 %v830_v29, 0.0  ;;  %v865_v46 = vmax.f32 %v856_v38, 0.0 }
 0x3f3   :  { %919 = vmatmul.f32.vlgmr.msrb.gmra.mxu2 %v864_v45  ;;  %1103 = vmatmul.msk.f32.vlgmr.msrb.gmra.mxu3 %vm205_vm1, %v865_v46 }
 0x3f6   :  { %v832_v51 = vpop.f32.mrf.mxu0  ;;  %v858_v62 = vpop.f32.mrf.mxu1 }
 0x3f7   :  { %v833_v6 = vadd.f32 %v832_v51, %v808_v39  ;;  %v859_v8 = vadd.f32 %v858_v62, %v809_v40 }
 0x3f9   :  { %v866_v43 = vmax.f32 %v833_v6, 0.0  ;;  %v867_v52 = vmax.f32 %v859_v8, 0.0 }
 0x3fb   :  { %922 = vmatmul.f32.gmra.mxu2 %v866_v43  ;;  %1104 = vmatmul.msk.f32.gmra.mxu3 %vm205_vm1, %v867_v52 }
 0x3fe   :  { %v835_v57 = vpop.f32.mrf.mxu0  ;;  %v861_v0 = vpop.f32.mrf.mxu1 }
 0x3ff   :  { %v836_v1 = vadd.f32 %v835_v57, %v808_v39  ;;  %v862_v2 = vadd.f32 %v861_v0, %v809_v40 }
 0x401   :  { %v868_v3 = vmax.f32 %v836_v1, 0.0  ;;  %v869_v9 = vmax.f32 %v862_v2, 0.0 }
 0x403   :  { %925 = vmatmul.f32.gmra.mxu2 %v868_v3  ;;  %1105 = vmatmul.msk.f32.gmra.mxu3 %vm205_vm1, %v869_v9 }
 0x476   :  { %v920_v49 = vpop.f32.mrf.mxu2  ;;  %v946_v53 = vpop.f32.mrf.mxu3 }
 0x477   :  { %v921_v54 = vadd.f32 %v1124_v48, %v920_v49 }
 0x479   :  { %v947_v55 = vadd.f32 %v946_v53, %v921_v54 }
 0x47b   :  { %v955_v56 = vmax.f32 %v947_v55, 0.0 }
 0x47d   :  { %1106 = vmatmul.msk.f32.vlgmr.msra.gmra.mxu0 %vm974_vm2, %v955_v56 }
 0x47e   :  { %v923_v58 = vpop.f32.mrf.mxu2  ;;  %v949_v59 = vpop.f32.mrf.mxu3 }
 0x47f   :  { %v924_v60 = vadd.f32 %v1124_v48, %v923_v58 }
 0x481   :  { %v950_v61 = vadd.f32 %v949_v59, %v924_v60 }
 0x483   :  { %v956_v5 = vmax.f32 %v950_v61, 0.0 }
 0x485   :  { %1107 = vmatmul.msk.f32.gmra.mxu0 %vm974_vm2, %v956_v5 }
 0x486   :  { %v926_v7 = vpop.f32.mrf.mxu2  ;;  %v952_v10 = vpop.f32.mrf.mxu3 }
 0x487   :  { %v927_v50 = vadd.f32 %v1124_v48, %v926_v7 }
 0x489   :  { %v953_v11 = vadd.f32 %v952_v10, %v927_v50 }
 0x48b   :  { %v957_v13 = vmax.f32 %v953_v11, 0.0 }
 0x48d   :  { %1108 = vmatmul.msk.f32.vlgmr.msra.gmra.mxu1 %vm974_vm2, %v957_v13 }
 0x4fa   :  { %v1001_v14 = vpop.f32.mrf.mxu0 }
 0x4fb   :  { %v1002_v23 = vadd.f32 %v1125_v18, %v1001_v14 }
 0x4fd   :  { %v1010_v26 = vmax.f32 %v1002_v23, 0.0 }
 0x502   :  { %v1004_v16 = vpop.f32.mrf.mxu0 }
 0x503   :  { %v1005_v21 = vadd.f32 %v1125_v18, %v1004_v16 }
 0x505   :  { %v1011_v25 = vmax.f32 %v1005_v21, 0.0 }
 0x50a   :  { %v1007_v20 = vpop.f32.mrf.mxu1 }
 0x50b   :  { %v1008_v22 = vadd.f32 %v1125_v18, %v1007_v20 }
 0x50d   :  { %v1012_v4 = vmax.f32 %v1008_v22, 0.0 }
 0x50f   :  { %1109 = vmatpush.msk.msra.mxu3 %vm1018_vm3, %v1012_v4 }
 0x511   :  { %1036 = vmatpush.msra.mxu3 %v1011_v25 }
 0x513   :  { %1037 = vmatpush.msra.mxu3 %v1010_v26 }
 0x514   :  { %1110 = vmatmul.msk.f32.vlgmr.msra.gmra.mxu3 %vm1014_vm4, %v1013_v27 }
 0x597   :  { %v1039_v30 = vpop.f32.mrf.mxu3 }
 0x598   :  { %v1046_v31 = vmul.f32 %v1126_v28, %v1039_v30 }
 0x59a   :  { %v1051_v32 = vadd.f32 %v1127_v24, %v1046_v31 }
 0x59c   :  { %1053 = vst.msk [vmem:[#allocation2] sm:$0x3] %vm1052_vm5, %v1051_v32 }
 0x59d   :  { %1064 = dma.vmem_to_hbm [thread:$0]  %s1060_s27, 32, %s1062_s4, [#allocation3]  }
 0x59e   :  { %1152 = dma.done.wait [#allocation3], 32  }
 0x59f   :  { %1153 = vsyncadd [#allocation3], 4294967264 }
 0x5a0   :  { %1069 = vsyncpa [#allocation3], 1 }

</bundles_post_ra>
